<compile_context>
chip_gen: v5e
topology: v5e:2x2
jax: 0.10.0
libtpu: 0.0.40
codegen_flags: <defaults>
</compile_context>

<pallas_src>
import functools
import math

import numpy as np
import jax
import jax.numpy as jnp
from jax import lax
from jax.experimental import pallas as pl
from jax.experimental.pallas import tpu as pltpu


COMPUTE_DTYPE = jnp.bfloat16      # storage / MXU dtype; matmuls accumulate in f32
MASK_BIG = 1e9                    # additive magnitude used for masked score entries
LN_EPS = 1e-5


def _round_up(x, m):
    return ((x + m - 1) // m) * m


# ----------------------------- Pallas kernels ------------------------------------


def hgt_layer_kernel(
        # scalar prefetch (SMEM): per-(sorted) canonical etype tables
        src_ids, dst_ids, firsts, lasts, counts,
        # blocked tensor inputs
        h_src_ref, h_dst_ref, mask_ref,
        # VMEM-resident parameter stacks (indexed in-kernel by e / dst type)
        wk_ref, bk_ref, wv_ref, bv_ref, wq_ref, bq_ref,
        wa_ref, ba_ref, skip_ref, gamma_ref, beta_ref,
        # output
        out_ref,
        # scratch
        q_scr, acc_scr,
        *, n_heads, d_k):
    """Grid step = (dst-row tile, canonical etype).

    Etypes sharing a destination node type are consecutive along the last grid
    axis: the cross-etype mean accumulates in VMEM scratch and the
    a_linear + gated-skip + LayerNorm tail runs fused on the last etype of each
    destination group (pl.when init / finalize)."""
    e = pl.program_id(1)
    first = firsts[e]
    last = lasts[e]
    d_t = dst_ids[e]

    h_src = h_src_ref[0]                            # [Ns, D]   (bf16)
    h_dst = h_dst_ref[0]                            # [Tn, D]   (bf16)

    # q depends only on the destination node type -> compute once per dst group,
    # cached in bf16 (halves VMEM footprint, native bf16 MXU rate for scores).
    @pl.when(first == 1)
    def _init():
        q = (jnp.dot(h_dst, wq_ref[d_t], preferred_element_type=jnp.float32)
             + bq_ref[d_t])
        q_scr[...] = q.astype(q_scr.dtype)
        acc_scr[...] = jnp.zeros_like(acc_scr)

    # relation_att*pri/sqrt(dk) and relation_msg are folded block-diagonally into
    # wk/bk and wv/bv at prepare time: one [Ns,D]x[D,D] matmul per etype, cast to
    # bf16 once (no per-head casts inside the head loop).
    k = (jnp.dot(h_src, wk_ref[e], preferred_element_type=jnp.float32)
         + bk_ref[e]).astype(COMPUTE_DTYPE)
    v = (jnp.dot(h_src, wv_ref[e], preferred_element_type=jnp.float32)
         + bv_ref[e]).astype(COMPUTE_DTYPE)
    q = q_scr[...]                                  # [Tn, D] bf16

    # int8 0/1 edge mask -> f32/bf16 once per step (hoisted out of the head loop).
    mask_f = mask_ref[0].astype(jnp.float32)        # [Tn, Ns]
    neg = (mask_f - 1.0) * MASK_BIG                 # 0 for edge, -1e9 for non-edge
    mask16 = mask_f.astype(COMPUTE_DTYPE)

    msgs = []
    for h in range(n_heads):
        sl = slice(h * d_k, (h + 1) * d_k)
        # q_h . k_h contracting the last axis of both operands (no k.T copy).
        scores = lax.dot_general(
            q[:, sl], k[:, sl],
            dimension_numbers=(((1,), (1,)), ((), ())),
            preferred_element_type=jnp.float32) + neg            # [Tn, Ns]
        m = jnp.max(scores, axis=-1, keepdims=True)
        # bf16 exp (EUP bf16 rate on v6e/v7x).  Multiplicative mask => dst rows
        # with zero in-edges for this etype get an exactly-zero message (DGL sum
        # over an empty edge set), and padded rows contribute nothing.
        p = jnp.exp((scores - m).astype(COMPUTE_DTYPE)) * mask16
        denom = jnp.maximum(
            jnp.sum(p.astype(jnp.float32), axis=-1, keepdims=True), 1e-30)
        attn = p * pl.reciprocal(denom, approx=True).astype(COMPUTE_DTYPE)
        msgs.append(jnp.dot(attn, v[:, sl], preferred_element_type=jnp.float32))
    # Single full-width (lane-dense) accumulator update per grid step.
    acc_scr[...] += jnp.concatenate(msgs, axis=-1)

    # Fused tail: cross-etype mean, a_linear, sigmoid-gated skip, LayerNorm.
    @pl.when(last == 1)
    def _finalize():
        cnt = jnp.full((1, 1), counts[e], dtype=jnp.float32)
        t = acc_scr[...] * (1.0 / cnt)
        alpha = jax.nn.sigmoid(
            jnp.full((1, 1), skip_ref[d_t, 0], dtype=jnp.float32))
        trans = (jnp.dot(t.astype(COMPUTE_DTYPE), wa_ref[d_t],
                         preferred_element_type=jnp.float32) + ba_ref[d_t]) * alpha
        trans = trans + h_dst.astype(jnp.float32) * (1.0 - alpha)
        mean = jnp.mean(trans, axis=-1, keepdims=True)
        var = jnp.mean(jnp.square(trans - mean), axis=-1, keepdims=True)
        normed = (trans - mean) * lax.rsqrt(var + LN_EPS)
        out_ref[0] = (normed * gamma_ref[d_t] + beta_ref[d_t]).astype(out_ref.dtype)


def fc_kernel(h_ref, w_ref, b_ref, out_ref):
    out_ref[...] = (jnp.dot(h_ref[...], w_ref[...],
                            preferred_element_type=jnp.float32) + b_ref[...])


# ----------------------------- graph / param prep --------------------------------


def build_graph_plan(graph, num_nodes):
    """Static (per-graph) tables: sorted etypes, scalar-prefetch id tables,
    int8 edge mask, padding / tiling sizes."""
    node_dict = graph["node_dict"]
    edge_dict = graph["edge_dict"]
    etypes = list(graph["canonical_etypes"])
    T = len(node_dict)

    n_max = max(num_nodes[nt] for nt in node_dict)
    if n_max <= 128:
        n_pad = _round_up(n_max, 8)
        # give the 'parallel' dst-row axis >=2 tiles when cleanly possible
        # (v7x megacore); keep halves 16-sublane aligned for bf16.
        tile_nd = n_pad // 2 if (n_pad % 32 == 0) else n_pad
    else:
        # 256-row dst tiles amortize per-step overhead and improve the MXU M-dim;
        # the int8 mask keeps the per-step mask DMA modest.
        tile_nd = 256
        n_pad = _round_up(n_max, tile_nd)

    # sort so etypes sharing a destination node type are consecutive
    order = sorted(range(len(etypes)), key=lambda i: node_dict[etypes[i][2]])
    sorted_etypes = [etypes[i] for i in order]

    src_tids = [node_dict[s] for (s, _, _) in sorted_etypes]
    dst_tids = [node_dict[d] for (_, _, d) in sorted_etypes]
    e_ids = [edge_dict[e] for (_, e, _) in sorted_etypes]

    group_size = {}
    for d in dst_tids:
        group_size[d] = group_size.get(d, 0) + 1
    n_e = len(sorted_etypes)
    firsts = [1 if (i == 0 or dst_tids[i] != dst_tids[i - 1]) else 0
              for i in range(n_e)]
    lasts = [1 if (i == n_e - 1 or dst_tids[i] != dst_tids[i + 1]) else 0
             for i in range(n_e)]
    counts = [group_size[d] for d in dst_tids]

    # int8 0/1 edge mask (1 = edge), zero-padded -> half the DMA of a bf16 bias
    mask_arr = np.zeros((n_e, n_pad, n_pad), np.int8)
    for idx, (s, e, d) in enumerate(sorted_etypes):
        m = np.asarray(graph["masks"][(s, e, d)])
        nd, ns = m.shape
        mask_arr[idx, :nd, :ns] = (m > 0).astype(np.int8)

    return dict(
        sorted_etypes=sorted_etypes,
        src_tids=src_tids, dst_tids=dst_tids, e_ids=e_ids,
        updated_types=set(dst_tids),
        src_ids=jnp.asarray(src_tids, jnp.int32),
        dst_ids=jnp.asarray(dst_tids, jnp.int32),
        firsts=jnp.asarray(firsts, jnp.int32),
        lasts=jnp.asarray(lasts, jnp.int32),
        counts=jnp.asarray(counts, jnp.int32),
        mask=jnp.asarray(mask_arr),
        n_pad=n_pad, tile_nd=tile_nd, n_types=T,
    )


def fold_layer_params(lp, plan, n_heads, d_k):
    """Parameter folding: relation_pri/sqrt(dk) and relation_att / relation_msg
    are absorbed as block-diagonal right-multiplies into the per-(src-type,
    etype) k/v projection weights + biases."""
    D = n_heads * d_k
    inv_sqrt_dk = 1.0 / math.sqrt(d_k)
    wk_l, bk_l, wv_l, bv_l = [], [], [], []
    for idx in range(len(plan["sorted_etypes"])):
        s_id = plan["src_tids"][idx]
        e_id = plan["e_ids"][idx]
        wk, bk = lp["k"][s_id]
        wv, bv = lp["v"][s_id]
        att = lp["rel_att"][e_id] * (lp["rel_pri"][e_id][:, None, None] * inv_sqrt_dk)
        msg = lp["rel_msg"][e_id]
        wk_l.append(jnp.einsum("dhi,hij->dhj",
                               wk.reshape(D, n_heads, d_k), att).reshape(D, D))
        bk_l.append(jnp.einsum("hi,hij->hj",
                               bk.reshape(n_heads, d_k), att).reshape(1, D))
        wv_l.append(jnp.einsum("dhi,hij->dhj",
                               wv.reshape(D, n_heads, d_k), msg).reshape(D, D))
        bv_l.append(jnp.einsum("hi,hij->hj",
                               bv.reshape(n_heads, d_k), msg).reshape(1, D))
    T = plan["n_types"]
    return dict(
        wk=jnp.stack(wk_l).astype(COMPUTE_DTYPE),
        bk=jnp.stack(bk_l),
        wv=jnp.stack(wv_l).astype(COMPUTE_DTYPE),
        bv=jnp.stack(bv_l),
        wq=jnp.stack([lp["q"][t][0] for t in range(T)]).astype(COMPUTE_DTYPE),
        bq=jnp.stack([lp["q"][t][1] for t in range(T)]),
        wa=jnp.stack([lp["a"][t][0] for t in range(T)]).astype(COMPUTE_DTYPE),
        ba=jnp.stack([lp["a"][t][1] for t in range(T)]),
        gamma=jnp.stack([lp["norm"][t][0] for t in range(T)]),
        beta=jnp.stack([lp["norm"][t][1] for t in range(T)]),
        skip=lp["skip"].reshape(T, 1),
    )


def prepare_model_params(params, plan, n_heads, d_k):
    """Hoisted out of the per-forward path: fold every layer's relation weights
    once and pre-pad the classifier to a lane-dense (128-multiple) class dim."""
    D = n_heads * d_k
    layers = [fold_layer_params(lp, plan, n_heads, d_k) for lp in params["layers"]]
    w_fc, b_fc = params["fc"]
    n_classes = w_fc.shape[1]
    c_pad = _round_up(n_classes, 128)
    w_pad = (jnp.zeros((D, c_pad), jnp.float32)
             .at[:, :n_classes].set(w_fc).astype(COMPUTE_DTYPE))
    b_pad = jnp.zeros((1, c_pad), jnp.float32).at[:, :n_classes].set(b_fc)
    return {"layers": layers, "fc": (w_pad, b_pad, n_classes)}


# ----------------------------- HGT forward (glue) --------------------------------


def hgt_layer_forward(h_all, fp, plan, n_heads, d_k):
    D = n_heads * d_k
    T = plan["n_types"]
    n_pad = plan["n_pad"]
    tile_nd = plan["tile_nd"]
    E = len(plan["sorted_etypes"])
    grid = (n_pad // tile_nd, E)

    def src_map(nd, e, src, dst, fst, lst, cnt):
        return (src[e], 0, 0)

    def dst_map(nd, e, src, dst, fst, lst, cnt):
        return (dst[e], nd, 0)

    def mask_map(nd, e, src, dst, fst, lst, cnt):
        return (e, nd, 0)

    vmem = pl.BlockSpec(memory_space=pltpu.MemorySpace.VMEM)   # whole array resident
    smem = pl.BlockSpec(memory_space=pltpu.MemorySpace.SMEM)

    kern = functools.partial(hgt_layer_kernel, n_heads=n_heads, d_k=d_k)

    # Rough working-set estimate; raise the scoped VMEM limit only when needed.
    est = (2 * (2 * E + 2 * T) * D * D            # bf16 weight stacks (VMEM-resident)
           + 4 * (2 * E + 6 * T) * D              # f32 bias / norm stacks
           + 4 * n_pad * D + 4 * tile_nd * D      # double-buffered h_src / h_dst
           + 2 * tile_nd * n_pad                  # int8 mask (double-buffered)
           + 4 * tile_nd * D                      # output (double-buffered)
           + 6 * tile_nd * D                      # scratch (bf16 q + f32 acc)
           + 16 * tile_nd * n_pad)                # f32 score / mask intermediates
    cp = dict(dimension_semantics=("parallel", "arbitrary"))
    if est > 12 * 1024 * 1024:
        # TODO(synk): re-derive budget for v7x (64 MiB physical VMEM) and add
        #             flash-style Ns tiling before scaling the graph further.
        cp["vmem_limit_bytes"] = int(min(64 * 1024 * 1024, 2 * est))

    out = pl.pallas_call(
        kern,
        out_shape=jax.ShapeDtypeStruct((T, n_pad, D), COMPUTE_DTYPE),
        grid_spec=pltpu.PrefetchScalarGridSpec(
            num_scalar_prefetch=5,
            grid=grid,
            in_specs=[
                pl.BlockSpec((1, n_pad, D), src_map),          # h (source rows)
                pl.BlockSpec((1, tile_nd, D), dst_map),        # h (dst-row tile)
                pl.BlockSpec((1, tile_nd, n_pad), mask_map),   # int8 edge mask
                vmem, vmem, vmem, vmem,                        # wk, bk, wv, bv
                vmem, vmem,                                    # wq, bq
                vmem, vmem,                                    # wa, ba
                smem,                                          # skip [T, 1]
                vmem, vmem,                                    # gamma, beta
            ],
            out_specs=pl.BlockSpec((1, tile_nd, D), dst_map),
            scratch_shapes=[pltpu.VMEM((tile_nd, D), COMPUTE_DTYPE),   # q (bf16)
                            pltpu.VMEM((tile_nd, D), jnp.float32)],    # agg accum
        ),
        compiler_params=pltpu.CompilerParams(**cp),
    )(plan["src_ids"], plan["dst_ids"], plan["firsts"], plan["lasts"],
      plan["counts"],
      h_all, h_all, plan["mask"],
      fp["wk"], fp["bk"], fp["wv"], fp["bv"], fp["wq"], fp["bq"],
      fp["wa"], fp["ba"], fp["skip"], fp["gamma"], fp["beta"])

    # Node types with no incoming canonical etype keep their previous features
    # (DGL semantics: ntype not in dstdata['t']).
    for t_id in range(T):
        if t_id not in plan["updated_types"]:
            out = out.at[t_id].set(h_all[t_id])
    return out


def hgt_forward(inputs, fparams, graph, plan, predict_category, n_heads, d_k):
    node_dict = graph["node_dict"]
    D = n_heads * d_k
    T = plan["n_types"]
    n_pad = plan["n_pad"]
    tile_nd = plan["tile_nd"]

    # stack + zero-pad node features once: [T, N_pad, D]
    h_all = jnp.zeros((T, n_pad, D), COMPUTE_DTYPE)
    for nt, t_id in node_dict.items():
        x = inputs[nt].astype(COMPUTE_DTYPE)
        h_all = h_all.at[t_id, :x.shape[0], :].set(x)

    for fp in fparams["layers"]:
        h_all = hgt_layer_forward(h_all, fp, plan, n_heads, d_k)

    # final classifier: row-tiled, class dim pre-padded to a lane-dense 128
    # multiple so stores are unmasked; slice the real classes afterwards.
    w_pad, b_pad, n_classes = fparams["fc"]
    c_pad = w_pad.shape[1]
    t_id = node_dict[predict_category]
    hp = h_all[t_id]                                  # [N_pad, D]
    out_pad = pl.pallas_call(
        fc_kernel,
        out_shape=jax.ShapeDtypeStruct((n_pad, c_pad), jnp.float32),
        grid=(n_pad // tile_nd,),
        in_specs=[pl.BlockSpec((tile_nd, D), lambda i: (i, 0)),
                  pl.BlockSpec((D, c_pad), lambda i: (0, 0)),
                  pl.BlockSpec((1, c_pad), lambda i: (0, 0))],
        out_specs=pl.BlockSpec((tile_nd, c_pad), lambda i: (i, 0)),
        compiler_params=pltpu.CompilerParams(dimension_semantics=("parallel",)),
    )(hp, w_pad, b_pad)
    n_real = inputs[predict_category].shape[0]
    return out_pad[:n_real, :n_classes]


# ----------------------------- pure-JAX reference --------------------------------


def ref_hgt(inputs, params, graph, predict_category, n_heads, d_k):
    h = dict(inputs)
    for lp in params["layers"]:
        agg = {nt: [] for nt in graph["node_dict"]}
        for (src_t, e_name, dst_t) in graph["canonical_etypes"]:
            e_id = graph["edge_dict"][e_name]
            s_id = graph["node_dict"][src_t]
            d_id = graph["node_dict"][dst_t]
            wk, bk = lp["k"][s_id]
            wv, bv = lp["v"][s_id]
            wq, bq = lp["q"][d_id]
            k = (h[src_t] @ wk + bk).reshape(-1, n_heads, d_k)
            v = (h[src_t] @ wv + bv).reshape(-1, n_heads, d_k)
            q = (h[dst_t] @ wq + bq).reshape(-1, n_heads, d_k)
            k = jnp.einsum("bij,ijk->bik", k, lp["rel_att"][e_id])
            v = jnp.einsum("bij,ijk->bik", v, lp["rel_msg"][e_id])
            pri = lp["rel_pri"][e_id]
            mask = graph["masks"][(src_t, e_name, dst_t)]
            scores = jnp.einsum("dhc,shc->dsh", q, k) * pri / math.sqrt(d_k)
            scores = jnp.where(mask[:, :, None] > 0, scores, -1e30)
            m = scores.max(axis=1, keepdims=True)
            e = jnp.exp(scores - m) * mask[:, :, None]
            attn = e / e.sum(axis=1, keepdims=True)
            out = jnp.einsum("dsh,shc->dhc", attn, v).reshape(-1, n_heads * d_k)
            agg[dst_t].append(out)
        new_h = {}
        for nt, n_id in graph["node_dict"].items():
            if not agg[nt]:
                new_h[nt] = h[nt]
                continue
            t = sum(agg[nt]) / float(len(agg[nt]))
            wa, ba = lp["a"][n_id]
            alpha = jax.nn.sigmoid(lp["skip"][n_id])
            trans = (t @ wa + ba) * alpha + h[nt] * (1.0 - alpha)
            gamma, beta = lp["norm"][n_id]
            mean = trans.mean(-1, keepdims=True)
            var = ((trans - mean) ** 2).mean(-1, keepdims=True)
            new_h[nt] = (trans - mean) / jnp.sqrt(var + 1e-5) * gamma + beta
        h = new_h
    w_fc, b_fc = params["fc"]
    return h[predict_category] @ w_fc + b_fc


# ----------------------------- parameter init ------------------------------------


def xavier_uniform(key, shape):
    fan_in, fan_out = shape[-2], shape[-1]
    limit = math.sqrt(6.0 / (fan_in + fan_out))
    return jax.random.uniform(key, shape, jnp.float32, -limit, limit)


def linear_init(key, in_dim, out_dim):
    k1, k2 = jax.random.split(key)
    limit = 1.0 / math.sqrt(in_dim)
    # weight stored pre-transposed: y = x @ W + b
    w = jax.random.uniform(k1, (in_dim, out_dim), jnp.float32, -limit, limit)
    b = jax.random.uniform(k2, (1, out_dim), jnp.float32, -limit, limit)
    return w, b


def init_hgt_params(key, num_hidden, n_classes, num_types, num_relations,
                    n_heads, n_layers):
    d_k = num_hidden // n_heads
    params = {"layers": []}
    for _ in range(n_layers):
        key, sub = jax.random.split(key)
        lp = {"k": [], "q": [], "v": [], "a": [], "norm": []}
        for _t in range(num_types):
            sub, k1, k2, k3, k4 = jax.random.split(sub, 5)
            lp["k"].append(linear_init(k1, num_hidden, num_hidden))
            lp["q"].append(linear_init(k2, num_hidden, num_hidden))
            lp["v"].append(linear_init(k3, num_hidden, num_hidden))
            lp["a"].append(linear_init(k4, num_hidden, num_hidden))
            lp["norm"].append((jnp.ones((1, num_hidden), jnp.float32),
                               jnp.zeros((1, num_hidden), jnp.float32)))
        sub, ka, km = jax.random.split(sub, 3)
        lp["rel_att"] = xavier_uniform(ka, (num_relations, n_heads, d_k, d_k))
        lp["rel_msg"] = xavier_uniform(km, (num_relations, n_heads, d_k, d_k))
        lp["rel_pri"] = jnp.ones((num_relations, n_heads), jnp.float32)
        lp["skip"] = jnp.ones((num_types,), jnp.float32)
        params["layers"].append(lp)
    key, kfc = jax.random.split(key)
    params["fc"] = linear_init(kfc, num_hidden, n_classes)
    return params


# ----------------------------- main ------------------------------------------------


if __name__ == "__main__":
    num_hidden = 32
    n_heads = 4
    d_k = num_hidden // n_heads
    n_classes = 8
    n_layers = 2
    predict_category = "paper"

    node_dict = {"paper": 0, "author": 1}
    edge_dict = {"writes": 0, "written_by": 1}
    canonical_etypes = [("author", "writes", "paper"),
                        ("paper", "written_by", "author")]
    num_nodes = {"paper": 8, "author": 8}

    # deterministic dense adjacency masks (every dst node has >=1 incoming edge)
    masks = {}
    for (s, e, d) in canonical_etypes:
        nd, ns = num_nodes[d], num_nodes[s]
        m = np.zeros((nd, ns), np.float32)
        for i in range(nd):
            for j in range(ns):
                if (i + 2 * j) % 3 != 0:
                    m[i, j] = 1.0
            m[i, i % ns] = 1.0
        masks[(s, e, d)] = jnp.asarray(m)

    graph = {
        "node_dict": node_dict,
        "edge_dict": edge_dict,
        "canonical_etypes": canonical_etypes,
        "masks": masks,
    }

    key = jax.random.PRNGKey(0)
    key, kp, ki0, ki1 = jax.random.split(key, 4)
    params = init_hgt_params(kp, num_hidden, n_classes, len(node_dict),
                             len(edge_dict), n_heads, n_layers)
    inputs = {
        "paper": jax.random.normal(ki0, (num_nodes["paper"], num_hidden), jnp.float32),
        "author": jax.random.normal(ki1, (num_nodes["author"], num_hidden), jnp.float32),
    }

    plan = build_graph_plan(graph, num_nodes)
    fparams = prepare_model_params(params, plan, n_heads, d_k)   # folded once

    out = hgt_forward(inputs, fparams, graph, plan, predict_category, n_heads, d_k)
    out = jax.block_until_ready(out)

    ref = ref_hgt(inputs, params, graph, predict_category, n_heads, d_k)
    ref = jax.block_until_ready(ref)

    assert out.shape == (num_nodes[predict_category], n_classes)
    assert bool(jnp.all(jnp.isfinite(out)))
    np.testing.assert_allclose(np.asarray(out), np.asarray(ref), rtol=5e-2, atol=5e-2)

    print("KERNEL_OK")
</pallas_src>

<mosaic_0001>
module attributes {stable_mosaic.version = 11 : i64} {
  func.func @hgt_layer_kernel(%arg0: i32, %arg1: i32, %arg2: memref<2xi32, #tpu.memory_space<smem>>, %arg3: memref<2xi32, #tpu.memory_space<smem>>, %arg4: memref<2xi32, #tpu.memory_space<smem>>, %arg5: memref<2xi32, #tpu.memory_space<smem>>, %arg6: memref<2xi32, #tpu.memory_space<smem>>, %arg7: memref<1x8x32xbf16, #tpu.memory_space<vmem>>, %arg8: memref<1x8x32xbf16, #tpu.memory_space<vmem>>, %arg9: memref<1x8x8xi8, #tpu.memory_space<vmem>>, %arg10: memref<2x32x32xbf16, #tpu.memory_space<vmem>>, %arg11: memref<2x1x32xf32, #tpu.memory_space<vmem>>, %arg12: memref<2x32x32xbf16, #tpu.memory_space<vmem>>, %arg13: memref<2x1x32xf32, #tpu.memory_space<vmem>>, %arg14: memref<2x32x32xbf16, #tpu.memory_space<vmem>>, %arg15: memref<2x1x32xf32, #tpu.memory_space<vmem>>, %arg16: memref<2x32x32xbf16, #tpu.memory_space<vmem>>, %arg17: memref<2x1x32xf32, #tpu.memory_space<vmem>>, %arg18: memref<2x1xf32, #tpu.memory_space<smem>>, %arg19: memref<2x1x32xf32, #tpu.memory_space<vmem>>, %arg20: memref<2x1x32xf32, #tpu.memory_space<vmem>>, %arg21: memref<1x8x32xbf16, #tpu.memory_space<vmem>>, %arg22: memref<8x32xbf16, #tpu.memory_space<vmem>>, %arg23: memref<8x32xf32, #tpu.memory_space<vmem>>) attributes {dimension_semantics = [#tpu.dimension_semantics<parallel>, #tpu.dimension_semantics<arbitrary>], iteration_bounds = array<i64: 1, 2>, scalar_prefetch = 5 : i64, scratch_operands = 2 : i64, tpu.core_type = #tpu.core_type<tc>, window_params = [{transform_indices = @transform_0, window_bounds = array<i64: 1, 8, 32>}, {transform_indices = @transform_1, window_bounds = array<i64: 1, 8, 32>}, {transform_indices = @transform_2, window_bounds = array<i64: 1, 8, 8>}, {pipeline_mode = #tpu.pipeline_mode<synchronous>, transform_indices = @transform_3, window_bounds = array<i64: 2, 32, 32>}, {pipeline_mode = #tpu.pipeline_mode<synchronous>, transform_indices = @transform_4, window_bounds = array<i64: 2, 1, 32>}, {pipeline_mode = #tpu.pipeline_mode<synchronous>, transform_indices = @transform_5, window_bounds = array<i64: 2, 32, 32>}, {pipeline_mode = #tpu.pipeline_mode<synchronous>, transform_indices = @transform_6, window_bounds = array<i64: 2, 1, 32>}, {pipeline_mode = #tpu.pipeline_mode<synchronous>, transform_indices = @transform_7, window_bounds = array<i64: 2, 32, 32>}, {pipeline_mode = #tpu.pipeline_mode<synchronous>, transform_indices = @transform_8, window_bounds = array<i64: 2, 1, 32>}, {pipeline_mode = #tpu.pipeline_mode<synchronous>, transform_indices = @transform_9, window_bounds = array<i64: 2, 32, 32>}, {pipeline_mode = #tpu.pipeline_mode<synchronous>, transform_indices = @transform_10, window_bounds = array<i64: 2, 1, 32>}, {transform_indices = @transform_11, window_bounds = array<i64: 2, 1>}, {pipeline_mode = #tpu.pipeline_mode<synchronous>, transform_indices = @transform_12, window_bounds = array<i64: 2, 1, 32>}, {pipeline_mode = #tpu.pipeline_mode<synchronous>, transform_indices = @transform_13, window_bounds = array<i64: 2, 1, 32>}, {transform_indices = @transform_14, window_bounds = array<i64: 1, 8, 32>}]} {
    %0 = arith.index_cast %arg1 : i32 to index
    %1 = memref.load %arg4[%0] : memref<2xi32, #tpu.memory_space<smem>>
    %2 = arith.index_cast %arg1 : i32 to index
    %3 = memref.load %arg5[%2] : memref<2xi32, #tpu.memory_space<smem>>
    %4 = arith.index_cast %arg1 : i32 to index
    %5 = memref.load %arg3[%4] : memref<2xi32, #tpu.memory_space<smem>>
    %c0 = arith.constant 0 : index
    %c0_0 = arith.constant 0 : index
    %c0_1 = arith.constant 0 : index
    %6 = vector.load %arg7[%c0, %c0_0, %c0_1] : memref<1x8x32xbf16, #tpu.memory_space<vmem>>, vector<1x8x32xbf16>
    %7 = vector.shape_cast %6 : vector<1x8x32xbf16> to vector<8x32xbf16>
    %c0_2 = arith.constant 0 : index
    %c0_3 = arith.constant 0 : index
    %c0_4 = arith.constant 0 : index
    %8 = vector.load %arg8[%c0_2, %c0_3, %c0_4] : memref<1x8x32xbf16, #tpu.memory_space<vmem>>, vector<1x8x32xbf16>
    %9 = vector.shape_cast %8 : vector<1x8x32xbf16> to vector<8x32xbf16>
    %c1_i32 = arith.constant 1 : i32
    %10 = arith.cmpi eq, %1, %c1_i32 : i32
    %11 = arith.extui %10 : i1 to i32
    %c0_i32 = arith.constant 0 : i32
    %12 = arith.cmpi ne, %11, %c0_i32 : i32
    scf.if %12 {
      %137 = arith.index_cast %5 : i32 to index
      %c0_47 = arith.constant 0 : index
      %c0_48 = arith.constant 0 : index
      %138 = vector.load %arg14[%137, %c0_47, %c0_48] : memref<2x32x32xbf16, #tpu.memory_space<vmem>>, vector<1x32x32xbf16>
      %139 = vector.shape_cast %138 : vector<1x32x32xbf16> to vector<32x32xbf16>
      %cst_49 = arith.constant dense<0.000000e+00> : vector<8x32xf32>
      %140 = tpu.matmul %9, %139, %cst_49 {dimension_numbers = #tpu.dot_dimension_numbers<[1], [0], [0], [1], [0, 0, 1, 1], [], []>} : vector<8x32xbf16>, vector<32x32xbf16>, vector<8x32xf32> -> vector<8x32xf32>
      %141 = arith.index_cast %5 : i32 to index
      %c0_50 = arith.constant 0 : index
      %c0_51 = arith.constant 0 : index
      %142 = vector.load %arg15[%141, %c0_50, %c0_51] : memref<2x1x32xf32, #tpu.memory_space<vmem>>, vector<1x1x32xf32>
      %143 = vector.shape_cast %142 : vector<1x1x32xf32> to vector<1x32xf32>
      %144 = vector.broadcast %143 : vector<1x32xf32> to vector<8x32xf32>
      %145 = arith.addf %140, %144 : vector<8x32xf32>
      %146 = arith.truncf %145 : vector<8x32xf32> to vector<8x32xbf16>
      %c0_52 = arith.constant 0 : index
      %c0_53 = arith.constant 0 : index
      %147 = vector.load %arg22[%c0_52, %c0_53] : memref<8x32xbf16, #tpu.memory_space<vmem>>, vector<8x32xbf16>
      tpu.vector_store %arg22[%c0_52, %c0_53], %146 {strides = array<i32>} : memref<8x32xbf16, #tpu.memory_space<vmem>>, vector<8x32xbf16>,
      %cst_54 = arith.constant 0.000000e+00 : f32
      %148 = vector.broadcast %cst_54 : f32 to vector<8x32xf32>
      %c0_55 = arith.constant 0 : index
      %c0_56 = arith.constant 0 : index
      %149 = vector.load %arg23[%c0_55, %c0_56] : memref<8x32xf32, #tpu.memory_space<vmem>>, vector<8x32xf32>
      tpu.vector_store %arg23[%c0_55, %c0_56], %148 {strides = array<i32>} : memref<8x32xf32, #tpu.memory_space<vmem>>, vector<8x32xf32>,
    } else {
    }
    %13 = arith.index_cast %arg1 : i32 to index
    %c0_5 = arith.constant 0 : index
    %c0_6 = arith.constant 0 : index
    %14 = vector.load %arg10[%13, %c0_5, %c0_6] : memref<2x32x32xbf16, #tpu.memory_space<vmem>>, vector<1x32x32xbf16>
    %15 = vector.shape_cast %14 : vector<1x32x32xbf16> to vector<32x32xbf16>
    %cst = arith.constant dense<0.000000e+00> : vector<8x32xf32>
    %16 = tpu.matmul %7, %15, %cst {dimension_numbers = #tpu.dot_dimension_numbers<[1], [0], [0], [1], [0, 0, 1, 1], [], []>} : vector<8x32xbf16>, vector<32x32xbf16>, vector<8x32xf32> -> vector<8x32xf32>
    %17 = arith.index_cast %arg1 : i32 to index
    %c0_7 = arith.constant 0 : index
    %c0_8 = arith.constant 0 : index
    %18 = vector.load %arg11[%17, %c0_7, %c0_8] : memref<2x1x32xf32, #tpu.memory_space<vmem>>, vector<1x1x32xf32>
    %19 = vector.shape_cast %18 : vector<1x1x32xf32> to vector<1x32xf32>
    %20 = vector.broadcast %19 : vector<1x32xf32> to vector<8x32xf32>
    %21 = arith.addf %16, %20 : vector<8x32xf32>
    %22 = arith.truncf %21 : vector<8x32xf32> to vector<8x32xbf16>
    %23 = arith.index_cast %arg1 : i32 to index
    %c0_9 = arith.constant 0 : index
    %c0_10 = arith.constant 0 : index
    %24 = vector.load %arg12[%23, %c0_9, %c0_10] : memref<2x32x32xbf16, #tpu.memory_space<vmem>>, vector<1x32x32xbf16>
    %25 = vector.shape_cast %24 : vector<1x32x32xbf16> to vector<32x32xbf16>
    %cst_11 = arith.constant dense<0.000000e+00> : vector<8x32xf32>
    %26 = tpu.matmul %7, %25, %cst_11 {dimension_numbers = #tpu.dot_dimension_numbers<[1], [0], [0], [1], [0, 0, 1, 1], [], []>} : vector<8x32xbf16>, vector<32x32xbf16>, vector<8x32xf32> -> vector<8x32xf32>
    %27 = arith.index_cast %arg1 : i32 to index
    %c0_12 = arith.constant 0 : index
    %c0_13 = arith.constant 0 : index
    %28 = vector.load %arg13[%27, %c0_12, %c0_13] : memref<2x1x32xf32, #tpu.memory_space<vmem>>, vector<1x1x32xf32>
    %29 = vector.shape_cast %28 : vector<1x1x32xf32> to vector<1x32xf32>
    %30 = vector.broadcast %29 : vector<1x32xf32> to vector<8x32xf32>
    %31 = arith.addf %26, %30 : vector<8x32xf32>
    %32 = arith.truncf %31 : vector<8x32xf32> to vector<8x32xbf16>
    %c0_14 = arith.constant 0 : index
    %c0_15 = arith.constant 0 : index
    %33 = vector.load %arg22[%c0_14, %c0_15] : memref<8x32xbf16, #tpu.memory_space<vmem>>, vector<8x32xbf16>
    %c0_16 = arith.constant 0 : index
    %c0_17 = arith.constant 0 : index
    %c0_18 = arith.constant 0 : index
    %34 = vector.load %arg9[%c0_16, %c0_17, %c0_18] : memref<1x8x8xi8, #tpu.memory_space<vmem>>, vector<1x8x8xi8>
    %35 = vector.shape_cast %34 : vector<1x8x8xi8> to vector<8x8xi8>
    %36 = arith.sitofp %35 : vector<8x8xi8> to vector<8x8xf32>
    %cst_19 = arith.constant 1.000000e+00 : f32
    %37 = vector.broadcast %cst_19 : f32 to vector<8x8xf32>
    %38 = arith.subf %36, %37 : vector<8x8xf32>
    %cst_20 = arith.constant 1.000000e+09 : f32
    %39 = vector.broadcast %cst_20 : f32 to vector<8x8xf32>
    %40 = arith.mulf %38, %39 : vector<8x8xf32>
    %41 = arith.truncf %36 : vector<8x8xf32> to vector<8x8xbf16>
    %42 = vector.extract_strided_slice %33 {offsets = [0, 0], sizes = [8, 8], strides = [1, 1]} : vector<8x32xbf16> to vector<8x8xbf16>
    %43 = vector.extract_strided_slice %22 {offsets = [0, 0], sizes = [8, 8], strides = [1, 1]} : vector<8x32xbf16> to vector<8x8xbf16>
    %cst_21 = arith.constant dense<0.000000e+00> : vector<8x8xf32>
    %44 = tpu.matmul %42, %43, %cst_21 {dimension_numbers = #tpu.dot_dimension_numbers<[1], [1], [0], [0], [0, 0, 1, 0], [], []>} : vector<8x8xbf16>, vector<8x8xbf16>, vector<8x8xf32> -> vector<8x8xf32>
    %45 = arith.addf %44, %40 : vector<8x8xf32>
    %cst_22 = arith.constant dense<0xFF800000> : vector<8xf32>
    %46 = vector.multi_reduction <maximumf>, %45, %cst_22 [1] : vector<8x8xf32> to vector<8xf32>
    %47 = vector.shape_cast %46 : vector<8xf32> to vector<8x1xf32>
    %48 = vector.broadcast %47 : vector<8x1xf32> to vector<8x8xf32>
    %49 = arith.subf %45, %48 : vector<8x8xf32>
    %50 = arith.truncf %49 : vector<8x8xf32> to vector<8x8xbf16>
    %51 = math.exp %50 : vector<8x8xbf16>
    %52 = arith.mulf %51, %41 : vector<8x8xbf16>
    %53 = arith.extf %52 : vector<8x8xbf16> to vector<8x8xf32>
    %cst_23 = arith.constant dense<0.000000e+00> : vector<8xf32>
    %54 = vector.multi_reduction <add>, %53, %cst_23 [1] : vector<8x8xf32> to vector<8xf32>
    %55 = vector.shape_cast %54 : vector<8xf32> to vector<8x1xf32>
    %cst_24 = arith.constant 1.000000e-30 : f32
    %56 = vector.broadcast %cst_24 : f32 to vector<8x1xf32>
    %57 = arith.maximumf %55, %56 : vector<8x1xf32>
    %58 = tpu.reciprocal %57 {approx = true} : vector<8x1xf32> -> vector<8x1xf32>
    %59 = arith.truncf %58 : vector<8x1xf32> to vector<8x1xbf16>
    %60 = vector.broadcast %59 : vector<8x1xbf16> to vector<8x8xbf16>
    %61 = arith.mulf %52, %60 : vector<8x8xbf16>
    %62 = vector.extract_strided_slice %32 {offsets = [0, 0], sizes = [8, 8], strides = [1, 1]} : vector<8x32xbf16> to vector<8x8xbf16>
    %cst_25 = arith.constant dense<0.000000e+00> : vector<8x8xf32>
    %63 = tpu.matmul %61, %62, %cst_25 {dimension_numbers = #tpu.dot_dimension_numbers<[1], [0], [0], [1], [0, 0, 1, 1], [], []>} : vector<8x8xbf16>, vector<8x8xbf16>, vector<8x8xf32> -> vector<8x8xf32>
    %64 = vector.extract_strided_slice %33 {offsets = [0, 8], sizes = [8, 8], strides = [1, 1]} : vector<8x32xbf16> to vector<8x8xbf16>
    %65 = vector.extract_strided_slice %22 {offsets = [0, 8], sizes = [8, 8], strides = [1, 1]} : vector<8x32xbf16> to vector<8x8xbf16>
    %cst_26 = arith.constant dense<0.000000e+00> : vector<8x8xf32>
    %66 = tpu.matmul %64, %65, %cst_26 {dimension_numbers = #tpu.dot_dimension_numbers<[1], [1], [0], [0], [0, 0, 1, 0], [], []>} : vector<8x8xbf16>, vector<8x8xbf16>, vector<8x8xf32> -> vector<8x8xf32>
    %67 = arith.addf %66, %40 : vector<8x8xf32>
    %cst_27 = arith.constant dense<0xFF800000> : vector<8xf32>
    %68 = vector.multi_reduction <maximumf>, %67, %cst_27 [1] : vector<8x8xf32> to vector<8xf32>
    %69 = vector.shape_cast %68 : vector<8xf32> to vector<8x1xf32>
    %70 = vector.broadcast %69 : vector<8x1xf32> to vector<8x8xf32>
    %71 = arith.subf %67, %70 : vector<8x8xf32>
    %72 = arith.truncf %71 : vector<8x8xf32> to vector<8x8xbf16>
    %73 = math.exp %72 : vector<8x8xbf16>
    %74 = arith.mulf %73, %41 : vector<8x8xbf16>
    %75 = arith.extf %74 : vector<8x8xbf16> to vector<8x8xf32>
    %cst_28 = arith.constant dense<0.000000e+00> : vector<8xf32>
    %76 = vector.multi_reduction <add>, %75, %cst_28 [1] : vector<8x8xf32> to vector<8xf32>
    %77 = vector.shape_cast %76 : vector<8xf32> to vector<8x1xf32>
    %cst_29 = arith.constant 1.000000e-30 : f32
    %78 = vector.broadcast %cst_29 : f32 to vector<8x1xf32>
    %79 = arith.maximumf %77, %78 : vector<8x1xf32>
    %80 = tpu.reciprocal %79 {approx = true} : vector<8x1xf32> -> vector<8x1xf32>
    %81 = arith.truncf %80 : vector<8x1xf32> to vector<8x1xbf16>
    %82 = vector.broadcast %81 : vector<8x1xbf16> to vector<8x8xbf16>
    %83 = arith.mulf %74, %82 : vector<8x8xbf16>
    %84 = vector.extract_strided_slice %32 {offsets = [0, 8], sizes = [8, 8], strides = [1, 1]} : vector<8x32xbf16> to vector<8x8xbf16>
    %cst_30 = arith.constant dense<0.000000e+00> : vector<8x8xf32>
    %85 = tpu.matmul %83, %84, %cst_30 {dimension_numbers = #tpu.dot_dimension_numbers<[1], [0], [0], [1], [0, 0, 1, 1], [], []>} : vector<8x8xbf16>, vector<8x8xbf16>, vector<8x8xf32> -> vector<8x8xf32>
    %86 = vector.extract_strided_slice %33 {offsets = [0, 16], sizes = [8, 8], strides = [1, 1]} : vector<8x32xbf16> to vector<8x8xbf16>
    %87 = vector.extract_strided_slice %22 {offsets = [0, 16], sizes = [8, 8], strides = [1, 1]} : vector<8x32xbf16> to vector<8x8xbf16>
    %cst_31 = arith.constant dense<0.000000e+00> : vector<8x8xf32>
    %88 = tpu.matmul %86, %87, %cst_31 {dimension_numbers = #tpu.dot_dimension_numbers<[1], [1], [0], [0], [0, 0, 1, 0], [], []>} : vector<8x8xbf16>, vector<8x8xbf16>, vector<8x8xf32> -> vector<8x8xf32>
    %89 = arith.addf %88, %40 : vector<8x8xf32>
    %cst_32 = arith.constant dense<0xFF800000> : vector<8xf32>
    %90 = vector.multi_reduction <maximumf>, %89, %cst_32 [1] : vector<8x8xf32> to vector<8xf32>
    %91 = vector.shape_cast %90 : vector<8xf32> to vector<8x1xf32>
    %92 = vector.broadcast %91 : vector<8x1xf32> to vector<8x8xf32>
    %93 = arith.subf %89, %92 : vector<8x8xf32>
    %94 = arith.truncf %93 : vector<8x8xf32> to vector<8x8xbf16>
    %95 = math.exp %94 : vector<8x8xbf16>
    %96 = arith.mulf %95, %41 : vector<8x8xbf16>
    %97 = arith.extf %96 : vector<8x8xbf16> to vector<8x8xf32>
    %cst_33 = arith.constant dense<0.000000e+00> : vector<8xf32>
    %98 = vector.multi_reduction <add>, %97, %cst_33 [1] : vector<8x8xf32> to vector<8xf32>
    %99 = vector.shape_cast %98 : vector<8xf32> to vector<8x1xf32>
    %cst_34 = arith.constant 1.000000e-30 : f32
    %100 = vector.broadcast %cst_34 : f32 to vector<8x1xf32>
    %101 = arith.maximumf %99, %100 : vector<8x1xf32>
    %102 = tpu.reciprocal %101 {approx = true} : vector<8x1xf32> -> vector<8x1xf32>
    %103 = arith.truncf %102 : vector<8x1xf32> to vector<8x1xbf16>
    %104 = vector.broadcast %103 : vector<8x1xbf16> to vector<8x8xbf16>
    %105 = arith.mulf %96, %104 : vector<8x8xbf16>
    %106 = vector.extract_strided_slice %32 {offsets = [0, 16], sizes = [8, 8], strides = [1, 1]} : vector<8x32xbf16> to vector<8x8xbf16>
    %cst_35 = arith.constant dense<0.000000e+00> : vector<8x8xf32>
    %107 = tpu.matmul %105, %106, %cst_35 {dimension_numbers = #tpu.dot_dimension_numbers<[1], [0], [0], [1], [0, 0, 1, 1], [], []>} : vector<8x8xbf16>, vector<8x8xbf16>, vector<8x8xf32> -> vector<8x8xf32>
    %108 = vector.extract_strided_slice %33 {offsets = [0, 24], sizes = [8, 8], strides = [1, 1]} : vector<8x32xbf16> to vector<8x8xbf16>
    %109 = vector.extract_strided_slice %22 {offsets = [0, 24], sizes = [8, 8], strides = [1, 1]} : vector<8x32xbf16> to vector<8x8xbf16>
    %cst_36 = arith.constant dense<0.000000e+00> : vector<8x8xf32>
    %110 = tpu.matmul %108, %109, %cst_36 {dimension_numbers = #tpu.dot_dimension_numbers<[1], [1], [0], [0], [0, 0, 1, 0], [], []>} : vector<8x8xbf16>, vector<8x8xbf16>, vector<8x8xf32> -> vector<8x8xf32>
    %111 = arith.addf %110, %40 : vector<8x8xf32>
    %cst_37 = arith.constant dense<0xFF800000> : vector<8xf32>
    %112 = vector.multi_reduction <maximumf>, %111, %cst_37 [1] : vector<8x8xf32> to vector<8xf32>
    %113 = vector.shape_cast %112 : vector<8xf32> to vector<8x1xf32>
    %114 = vector.broadcast %113 : vector<8x1xf32> to vector<8x8xf32>
    %115 = arith.subf %111, %114 : vector<8x8xf32>
    %116 = arith.truncf %115 : vector<8x8xf32> to vector<8x8xbf16>
    %117 = math.exp %116 : vector<8x8xbf16>
    %118 = arith.mulf %117, %41 : vector<8x8xbf16>
    %119 = arith.extf %118 : vector<8x8xbf16> to vector<8x8xf32>
    %cst_38 = arith.constant dense<0.000000e+00> : vector<8xf32>
    %120 = vector.multi_reduction <add>, %119, %cst_38 [1] : vector<8x8xf32> to vector<8xf32>
    %121 = vector.shape_cast %120 : vector<8xf32> to vector<8x1xf32>
    %cst_39 = arith.constant 1.000000e-30 : f32
    %122 = vector.broadcast %cst_39 : f32 to vector<8x1xf32>
    %123 = arith.maximumf %121, %122 : vector<8x1xf32>
    %124 = tpu.reciprocal %123 {approx = true} : vector<8x1xf32> -> vector<8x1xf32>
    %125 = arith.truncf %124 : vector<8x1xf32> to vector<8x1xbf16>
    %126 = vector.broadcast %125 : vector<8x1xbf16> to vector<8x8xbf16>
    %127 = arith.mulf %118, %126 : vector<8x8xbf16>
    %128 = vector.extract_strided_slice %32 {offsets = [0, 24], sizes = [8, 8], strides = [1, 1]} : vector<8x32xbf16> to vector<8x8xbf16>
    %cst_40 = arith.constant dense<0.000000e+00> : vector<8x8xf32>
    %129 = tpu.matmul %127, %128, %cst_40 {dimension_numbers = #tpu.dot_dimension_numbers<[1], [0], [0], [1], [0, 0, 1, 1], [], []>} : vector<8x8xbf16>, vector<8x8xbf16>, vector<8x8xf32> -> vector<8x8xf32>
    %c0_41 = arith.constant 0 : index
    %c0_42 = arith.constant 0 : index
    %130 = vector.load %arg23[%c0_41, %c0_42] : memref<8x32xf32, #tpu.memory_space<vmem>>, vector<8x32xf32>
    %131 = tpu.concatenate %63, %85, %107, %129 in 1 : vector<8x8xf32>, vector<8x8xf32>, vector<8x8xf32>, vector<8x8xf32> -> vector<8x32xf32>
    %132 = arith.addf %130, %131 : vector<8x32xf32>
    %c0_43 = arith.constant 0 : index
    %c0_44 = arith.constant 0 : index
    %133 = vector.load %arg23[%c0_43, %c0_44] : memref<8x32xf32, #tpu.memory_space<vmem>>, vector<8x32xf32>
    tpu.vector_store %arg23[%c0_43, %c0_44], %132 {strides = array<i32>} : memref<8x32xf32, #tpu.memory_space<vmem>>, vector<8x32xf32>,
    %c1_i32_45 = arith.constant 1 : i32
    %134 = arith.cmpi eq, %3, %c1_i32_45 : i32
    %135 = arith.extui %134 : i1 to i32
    %c0_i32_46 = arith.constant 0 : i32
    %136 = arith.cmpi ne, %135, %c0_i32_46 : i32
    scf.if %136 {
      %137 = arith.index_cast %arg1 : i32 to index
      %138 = memref.load %arg6[%137] : memref<2xi32, #tpu.memory_space<smem>>
      %139 = arith.sitofp %138 : i32 to f32
      %140 = vector.broadcast %139 : f32 to vector<1x1xf32>
      %c0_47 = arith.constant 0 : index
      %c0_48 = arith.constant 0 : index
      %141 = vector.load %arg23[%c0_47, %c0_48] : memref<8x32xf32, #tpu.memory_space<vmem>>, vector<8x32xf32>
      %cst_49 = arith.constant 1.000000e+00 : f32
      %142 = vector.broadcast %cst_49 : f32 to vector<1x1xf32>
      %143 = arith.divf %142, %140 : vector<1x1xf32>
      %144 = vector.broadcast %143 : vector<1x1xf32> to vector<8x32xf32>
      %145 = arith.mulf %141, %144 : vector<8x32xf32>
      %146 = arith.index_cast %5 : i32 to index
      %c0_50 = arith.constant 0 : index
      %147 = memref.load %arg18[%146, %c0_50] : memref<2x1xf32, #tpu.memory_space<smem>>
      %148 = vector.broadcast %147 : f32 to vector<1x1xf32>
      %149 = arith.negf %148 : vector<1x1xf32>
      %150 = math.exp %149 : vector<1x1xf32>
      %cst_51 = arith.constant 1.000000e+00 : f32
      %151 = vector.broadcast %cst_51 : f32 to vector<1x1xf32>
      %152 = arith.addf %151, %150 : vector<1x1xf32>
      %153 = arith.divf %151, %152 : vector<1x1xf32>
      %154 = arith.truncf %145 : vector<8x32xf32> to vector<8x32xbf16>
      %155 = arith.index_cast %5 : i32 to index
      %c0_52 = arith.constant 0 : index
      %c0_53 = arith.constant 0 : index
      %156 = vector.load %arg16[%155, %c0_52, %c0_53] : memref<2x32x32xbf16, #tpu.memory_space<vmem>>, vector<1x32x32xbf16>
      %157 = vector.shape_cast %156 : vector<1x32x32xbf16> to vector<32x32xbf16>
      %cst_54 = arith.constant dense<0.000000e+00> : vector<8x32xf32>
      %158 = tpu.matmul %154, %157, %cst_54 {dimension_numbers = #tpu.dot_dimension_numbers<[1], [0], [0], [1], [0, 0, 1, 1], [], []>} : vector<8x32xbf16>, vector<32x32xbf16>, vector<8x32xf32> -> vector<8x32xf32>
      %159 = arith.index_cast %5 : i32 to index
      %c0_55 = arith.constant 0 : index
      %c0_56 = arith.constant 0 : index
      %160 = vector.load %arg17[%159, %c0_55, %c0_56] : memref<2x1x32xf32, #tpu.memory_space<vmem>>, vector<1x1x32xf32>
      %161 = vector.shape_cast %160 : vector<1x1x32xf32> to vector<1x32xf32>
      %162 = vector.broadcast %161 : vector<1x32xf32> to vector<8x32xf32>
      %163 = arith.addf %158, %162 : vector<8x32xf32>
      %164 = vector.broadcast %153 : vector<1x1xf32> to vector<8x32xf32>
      %165 = arith.mulf %163, %164 : vector<8x32xf32>
      %166 = arith.extf %9 : vector<8x32xbf16> to vector<8x32xf32>
      %cst_57 = arith.constant 1.000000e+00 : f32
      %167 = vector.broadcast %cst_57 : f32 to vector<1x1xf32>
      %168 = arith.subf %167, %153 : vector<1x1xf32>
      %169 = vector.broadcast %168 : vector<1x1xf32> to vector<8x32xf32>
      %170 = arith.mulf %166, %169 : vector<8x32xf32>
      %171 = arith.addf %165, %170 : vector<8x32xf32>
      %cst_58 = arith.constant dense<0.000000e+00> : vector<8xf32>
      %172 = vector.multi_reduction <add>, %171, %cst_58 [1] : vector<8x32xf32> to vector<8xf32>
      %173 = vector.shape_cast %172 : vector<8xf32> to vector<8x1xf32>
      %cst_59 = arith.constant 3.200000e+01 : f32
      %174 = vector.broadcast %cst_59 : f32 to vector<8x1xf32>
      %175 = arith.divf %173, %174 : vector<8x1xf32>
      %176 = vector.broadcast %175 : vector<8x1xf32> to vector<8x32xf32>
      %177 = arith.subf %171, %176 : vector<8x32xf32>
      %178 = arith.mulf %177, %177 : vector<8x32xf32>
      %cst_60 = arith.constant dense<0.000000e+00> : vector<8xf32>
      %179 = vector.multi_reduction <add>, %178, %cst_60 [1] : vector<8x32xf32> to vector<8xf32>
      %180 = vector.shape_cast %179 : vector<8xf32> to vector<8x1xf32>
      %cst_61 = arith.constant 3.200000e+01 : f32
      %181 = vector.broadcast %cst_61 : f32 to vector<8x1xf32>
      %182 = arith.divf %180, %181 : vector<8x1xf32>
      %183 = vector.broadcast %175 : vector<8x1xf32> to vector<8x32xf32>
      %184 = arith.subf %171, %183 : vector<8x32xf32>
      %cst_62 = arith.constant 9.99999974E-6 : f32
      %185 = vector.broadcast %cst_62 : f32 to vector<8x1xf32>
      %186 = arith.addf %182, %185 : vector<8x1xf32>
      %187 = math.rsqrt %186 : vector<8x1xf32>
      %188 = vector.broadcast %187 : vector<8x1xf32> to vector<8x32xf32>
      %189 = arith.mulf %184, %188 : vector<8x32xf32>
      %190 = arith.index_cast %5 : i32 to index
      %c0_63 = arith.constant 0 : index
      %c0_64 = arith.constant 0 : index
      %191 = vector.load %arg19[%190, %c0_63, %c0_64] : memref<2x1x32xf32, #tpu.memory_space<vmem>>, vector<1x1x32xf32>
      %192 = vector.shape_cast %191 : vector<1x1x32xf32> to vector<1x32xf32>
      %193 = vector.broadcast %192 : vector<1x32xf32> to vector<8x32xf32>
      %194 = arith.mulf %189, %193 : vector<8x32xf32>
      %195 = arith.index_cast %5 : i32 to index
      %c0_65 = arith.constant 0 : index
      %c0_66 = arith.constant 0 : index
      %196 = vector.load %arg20[%195, %c0_65, %c0_66] : memref<2x1x32xf32, #tpu.memory_space<vmem>>, vector<1x1x32xf32>
      %197 = vector.shape_cast %196 : vector<1x1x32xf32> to vector<1x32xf32>
      %198 = vector.broadcast %197 : vector<1x32xf32> to vector<8x32xf32>
      %199 = arith.addf %194, %198 : vector<8x32xf32>
      %200 = arith.truncf %199 : vector<8x32xf32> to vector<8x32xbf16>
      %c0_67 = arith.constant 0 : index
      %c0_68 = arith.constant 0 : index
      %c0_69 = arith.constant 0 : index
      %201 = vector.load %arg21[%c0_67, %c0_68, %c0_69] : memref<1x8x32xbf16, #tpu.memory_space<vmem>>, vector<1x8x32xbf16>
      %202 = vector.shape_cast %201 : vector<1x8x32xbf16> to vector<8x32xbf16>
      %203 = vector.shape_cast %200 : vector<8x32xbf16> to vector<1x8x32xbf16>
      tpu.vector_store %arg21[%c0_67, %c0_68, %c0_69], %203 {strides = array<i32>} : memref<1x8x32xbf16, #tpu.memory_space<vmem>>, vector<1x8x32xbf16>,
    } else {
    }
    return
  }
  func.func @transform_0(%arg0: i32, %arg1: i32, %arg2: memref<2xi32, #tpu.memory_space<smem>>, %arg3: memref<2xi32, #tpu.memory_space<smem>>, %arg4: memref<2xi32, #tpu.memory_space<smem>>, %arg5: memref<2xi32, #tpu.memory_space<smem>>, %arg6: memref<2xi32, #tpu.memory_space<smem>>) -> (i32, i32, i32) {
    %0 = arith.index_cast %arg1 : i32 to index
    %1 = memref.load %arg2[%0] : memref<2xi32, #tpu.memory_space<smem>>
    %c0_i32 = arith.constant 0 : i32
    %c0_i32_0 = arith.constant 0 : i32
    %c0_i32_1 = arith.constant 0 : i32
    return %1, %c0_i32, %c0_i32_0 : i32, i32, i32
  }
  func.func @transform_1(%arg0: i32, %arg1: i32, %arg2: memref<2xi32, #tpu.memory_space<smem>>, %arg3: memref<2xi32, #tpu.memory_space<smem>>, %arg4: memref<2xi32, #tpu.memory_space<smem>>, %arg5: memref<2xi32, #tpu.memory_space<smem>>, %arg6: memref<2xi32, #tpu.memory_space<smem>>) -> (i32, i32, i32) {
    %0 = arith.index_cast %arg1 : i32 to index
    %1 = memref.load %arg3[%0] : memref<2xi32, #tpu.memory_space<smem>>
    %c0_i32 = arith.constant 0 : i32
    %c0_i32_0 = arith.constant 0 : i32
    return %1, %arg0, %c0_i32 : i32, i32, i32
  }
  func.func @transform_2(%arg0: i32, %arg1: i32, %arg2: memref<2xi32, #tpu.memory_space<smem>>, %arg3: memref<2xi32, #tpu.memory_space<smem>>, %arg4: memref<2xi32, #tpu.memory_space<smem>>, %arg5: memref<2xi32, #tpu.memory_space<smem>>, %arg6: memref<2xi32, #tpu.memory_space<smem>>) -> (i32, i32, i32) {
    %c0_i32 = arith.constant 0 : i32
    %c0_i32_0 = arith.constant 0 : i32
    return %arg1, %arg0, %c0_i32 : i32, i32, i32
  }
  func.func @transform_3(%arg0: i32, %arg1: i32, %arg2: memref<2xi32, #tpu.memory_space<smem>>, %arg3: memref<2xi32, #tpu.memory_space<smem>>, %arg4: memref<2xi32, #tpu.memory_space<smem>>, %arg5: memref<2xi32, #tpu.memory_space<smem>>, %arg6: memref<2xi32, #tpu.memory_space<smem>>) -> (i32, i32, i32) {
    %c0_i32 = arith.constant 0 : i32
    %c0_i32_0 = arith.constant 0 : i32
    %c0_i32_1 = arith.constant 0 : i32
    %c0_i32_2 = arith.constant 0 : i32
    return %c0_i32, %c0_i32_0, %c0_i32_1 : i32, i32, i32
  }
  func.func @transform_4(%arg0: i32, %arg1: i32, %arg2: memref<2xi32, #tpu.memory_space<smem>>, %arg3: memref<2xi32, #tpu.memory_space<smem>>, %arg4: memref<2xi32, #tpu.memory_space<smem>>, %arg5: memref<2xi32, #tpu.memory_space<smem>>, %arg6: memref<2xi32, #tpu.memory_space<smem>>) -> (i32, i32, i32) {
    %c0_i32 = arith.constant 0 : i32
    %c0_i32_0 = arith.constant 0 : i32
    %c0_i32_1 = arith.constant 0 : i32
    %c0_i32_2 = arith.constant 0 : i32
    return %c0_i32, %c0_i32_0, %c0_i32_1 : i32, i32, i32
  }
  func.func @transform_5(%arg0: i32, %arg1: i32, %arg2: memref<2xi32, #tpu.memory_space<smem>>, %arg3: memref<2xi32, #tpu.memory_space<smem>>, %arg4: memref<2xi32, #tpu.memory_space<smem>>, %arg5: memref<2xi32, #tpu.memory_space<smem>>, %arg6: memref<2xi32, #tpu.memory_space<smem>>) -> (i32, i32, i32) {
    %c0_i32 = arith.constant 0 : i32
    %c0_i32_0 = arith.constant 0 : i32
    %c0_i32_1 = arith.constant 0 : i32
    %c0_i32_2 = arith.constant 0 : i32
    return %c0_i32, %c0_i32_0, %c0_i32_1 : i32, i32, i32
  }
  func.func @transform_6(%arg0: i32, %arg1: i32, %arg2: memref<2xi32, #tpu.memory_space<smem>>, %arg3: memref<2xi32, #tpu.memory_space<smem>>, %arg4: memref<2xi32, #tpu.memory_space<smem>>, %arg5: memref<2xi32, #tpu.memory_space<smem>>, %arg6: memref<2xi32, #tpu.memory_space<smem>>) -> (i32, i32, i32) {
    %c0_i32 = arith.constant 0 : i32
    %c0_i32_0 = arith.constant 0 : i32
    %c0_i32_1 = arith.constant 0 : i32
    %c0_i32_2 = arith.constant 0 : i32
    return %c0_i32, %c0_i32_0, %c0_i32_1 : i32, i32, i32
  }
  func.func @transform_7(%arg0: i32, %arg1: i32, %arg2: memref<2xi32, #tpu.memory_space<smem>>, %arg3: memref<2xi32, #tpu.memory_space<smem>>, %arg4: memref<2xi32, #tpu.memory_space<smem>>, %arg5: memref<2xi32, #tpu.memory_space<smem>>, %arg6: memref<2xi32, #tpu.memory_space<smem>>) -> (i32, i32, i32) {
    %c0_i32 = arith.constant 0 : i32
    %c0_i32_0 = arith.constant 0 : i32
    %c0_i32_1 = arith.constant 0 : i32
    %c0_i32_2 = arith.constant 0 : i32
    return %c0_i32, %c0_i32_0, %c0_i32_1 : i32, i32, i32
  }
  func.func @transform_8(%arg0: i32, %arg1: i32, %arg2: memref<2xi32, #tpu.memory_space<smem>>, %arg3: memref<2xi32, #tpu.memory_space<smem>>, %arg4: memref<2xi32, #tpu.memory_space<smem>>, %arg5: memref<2xi32, #tpu.memory_space<smem>>, %arg6: memref<2xi32, #tpu.memory_space<smem>>) -> (i32, i32, i32) {
    %c0_i32 = arith.constant 0 : i32
    %c0_i32_0 = arith.constant 0 : i32
    %c0_i32_1 = arith.constant 0 : i32
    %c0_i32_2 = arith.constant 0 : i32
    return %c0_i32, %c0_i32_0, %c0_i32_1 : i32, i32, i32
  }
  func.func @transform_9(%arg0: i32, %arg1: i32, %arg2: memref<2xi32, #tpu.memory_space<smem>>, %arg3: memref<2xi32, #tpu.memory_space<smem>>, %arg4: memref<2xi32, #tpu.memory_space<smem>>, %arg5: memref<2xi32, #tpu.memory_space<smem>>, %arg6: memref<2xi32, #tpu.memory_space<smem>>) -> (i32, i32, i32) {
    %c0_i32 = arith.constant 0 : i32
    %c0_i32_0 = arith.constant 0 : i32
    %c0_i32_1 = arith.constant 0 : i32
    %c0_i32_2 = arith.constant 0 : i32
    return %c0_i32, %c0_i32_0, %c0_i32_1 : i32, i32, i32
  }
  func.func @transform_10(%arg0: i32, %arg1: i32, %arg2: memref<2xi32, #tpu.memory_space<smem>>, %arg3: memref<2xi32, #tpu.memory_space<smem>>, %arg4: memref<2xi32, #tpu.memory_space<smem>>, %arg5: memref<2xi32, #tpu.memory_space<smem>>, %arg6: memref<2xi32, #tpu.memory_space<smem>>) -> (i32, i32, i32) {
    %c0_i32 = arith.constant 0 : i32
    %c0_i32_0 = arith.constant 0 : i32
    %c0_i32_1 = arith.constant 0 : i32
    %c0_i32_2 = arith.constant 0 : i32
    return %c0_i32, %c0_i32_0, %c0_i32_1 : i32, i32, i32
  }
  func.func @transform_11(%arg0: i32, %arg1: i32, %arg2: memref<2xi32, #tpu.memory_space<smem>>, %arg3: memref<2xi32, #tpu.memory_space<smem>>, %arg4: memref<2xi32, #tpu.memory_space<smem>>, %arg5: memref<2xi32, #tpu.memory_space<smem>>, %arg6: memref<2xi32, #tpu.memory_space<smem>>) -> (i32, i32) {
    %c0_i32 = arith.constant 0 : i32
    %c0_i32_0 = arith.constant 0 : i32
    %c0_i32_1 = arith.constant 0 : i32
    return %c0_i32, %c0_i32_0 : i32, i32
  }
  func.func @transform_12(%arg0: i32, %arg1: i32, %arg2: memref<2xi32, #tpu.memory_space<smem>>, %arg3: memref<2xi32, #tpu.memory_space<smem>>, %arg4: memref<2xi32, #tpu.memory_space<smem>>, %arg5: memref<2xi32, #tpu.memory_space<smem>>, %arg6: memref<2xi32, #tpu.memory_space<smem>>) -> (i32, i32, i32) {
    %c0_i32 = arith.constant 0 : i32
    %c0_i32_0 = arith.constant 0 : i32
    %c0_i32_1 = arith.constant 0 : i32
    %c0_i32_2 = arith.constant 0 : i32
    return %c0_i32, %c0_i32_0, %c0_i32_1 : i32, i32, i32
  }
  func.func @transform_13(%arg0: i32, %arg1: i32, %arg2: memref<2xi32, #tpu.memory_space<smem>>, %arg3: memref<2xi32, #tpu.memory_space<smem>>, %arg4: memref<2xi32, #tpu.memory_space<smem>>, %arg5: memref<2xi32, #tpu.memory_space<smem>>, %arg6: memref<2xi32, #tpu.memory_space<smem>>) -> (i32, i32, i32) {
    %c0_i32 = arith.constant 0 : i32
    %c0_i32_0 = arith.constant 0 : i32
    %c0_i32_1 = arith.constant 0 : i32
    %c0_i32_2 = arith.constant 0 : i32
    return %c0_i32, %c0_i32_0, %c0_i32_1 : i32, i32, i32
  }
  func.func @transform_14(%arg0: i32, %arg1: i32, %arg2: memref<2xi32, #tpu.memory_space<smem>>, %arg3: memref<2xi32, #tpu.memory_space<smem>>, %arg4: memref<2xi32, #tpu.memory_space<smem>>, %arg5: memref<2xi32, #tpu.memory_space<smem>>, %arg6: memref<2xi32, #tpu.memory_space<smem>>) -> (i32, i32, i32) {
    %0 = arith.index_cast %arg1 : i32 to index
    %1 = memref.load %arg3[%0] : memref<2xi32, #tpu.memory_space<smem>>
    %c0_i32 = arith.constant 0 : i32
    %c0_i32_0 = arith.constant 0 : i32
    return %1, %arg0, %c0_i32 : i32, i32, i32
  }
}

</mosaic_0001>

<bundles_post_ra>
// kernel: tpu_custom_call.1
= control target key start
LH: loop header
LB: loop body
LE: loop exit
PB: predicated region body
PF: predicated region fallthrough
CT: control target
= control target key end

     0   :  { %s2188_s23 = smov [#allocation6]   ;;  %s2189_s29 = smov [#allocation7]   ;;  %s2788_s0 = inlined_call_operand.vmem [shape: s32[2], index: 0, kind: input, shape index: {}]   ;;  %s2789_s5 = inlined_call_operand.hbm [shape: bf16[2,8,32], index: 5, kind: input, shape index: {}]   ;;  %s2790_s6 = inlined_call_operand.hbm [shape: bf16[2,8,32], index: 6, kind: input, shape index: {}]   ;;  %s2791_s7 = inlined_call_operand.vmem [shape: s8[2,8,8], index: 7, kind: input, shape index: {}]   ;;  %s2792_s8 = inlined_call_operand.hbm [shape: bf16[2,32,32], index: 8, kind: input, shape index: {}]   ;;  %s2793_s9 = inlined_call_operand.vmem [shape: f32[2,1,32], index: 9, kind: input, shape index: {}]   ;;  %s2794_s10 = inlined_call_operand.hbm [shape: bf16[2,32,32], index: 10, kind: input, shape index: {}]   ;;  %s2795_s11 = inlined_call_operand.vmem [shape: f32[2,1,32], index: 11, kind: input, shape index: {}]   ;;  %s2796_s12 = inlined_call_operand.hbm [shape: bf16[2,32,32], index: 12, kind: input, shape index: {}]   ;;  %s2797_s13 = inlined_call_operand.vmem [shape: f32[2,1,32], index: 13, kind: input, shape index: {}]   ;;  %s2798_s14 = inlined_call_operand.hbm [shape: bf16[2,32,32], index: 14, kind: input, shape index: {}]   ;;  %s2799_s15 = inlined_call_operand.vmem [shape: f32[2,1,32], index: 15, kind: input, shape index: {}]   ;;  %s2800_s16 = inlined_call_operand.vmem [shape: f32[2,1], index: 16, kind: input, shape index: {}]   ;;  %s2801_s17 = inlined_call_operand.vmem [shape: f32[2,1,32], index: 17, kind: input, shape index: {}]   ;;  %s2802_s18 = inlined_call_operand.vmem [shape: f32[2,1,32], index: 18, kind: input, shape index: {}]   ;;  %s2803_s19 = inlined_call_operand.hbm [shape: bf16[2,8,32], index: 19, kind: output, shape index: {}]   ;;  %s2804_s1 = inlined_call_operand.hbm [shape: s32[2], index: 1, kind: input, shape index: {}]   ;;  %s2805_s2 = inlined_call_operand.hbm [shape: s32[2], index: 2, kind: input, shape index: {}]   ;;  %s2806_s3 = inlined_call_operand.hbm [shape: s32[2], index: 3, kind: input, shape index: {}]   ;;  %s2807_s4 = inlined_call_operand.hbm [shape: s32[2], index: 4, kind: input, shape index: {}]  }
   0x1   :  { %2824 = sst [smem:[#allocation44_spill]] %s2788_s0  ;;  %s30_s22 = sshll.u32 %s2804_s1, 4  ;;  %s31_s22 = int_to_ptr.hbm [resolvable:$true] %s30_s22 }
   0x2   :  { %2825 = sst [smem:[#allocation45_spill]] %s2789_s5  ;;  %s40_s28 = sshll.u32 %s2806_s3, 4  ;;  %s41_s28 = int_to_ptr.hbm [resolvable:$true] %s40_s28 }
   0x3   :  { %2826 = sst [smem:[#allocation46_spill]] %s2790_s6  ;;  %s2187_s6 = smov [#allocation5]  }
   0x4   :  { %2827 = sst [smem:[#allocation47_spill]] %s2791_s7  ;;  %s35_s7 = sshll.u32 %s2805_s2, 4  ;;  %s36_s7 = int_to_ptr.hbm [resolvable:$true] %s35_s7 }
   0x5   :  { %2828 = sst [smem:[#allocation48_spill]] %s2792_s8  ;;  %s2190_s0 = smov [#allocation8]  }
   0x6   :  { %2829 = sst [smem:[#allocation49_spill]] %s2793_s9 }
   0x7   :  { %2830 = sst [smem:[#allocation50_spill]] %s2794_s10 }
   0x8   :  { %2831 = sst [smem:[#allocation51_spill]] %s2795_s11 }
   0x9   :  { %2832 = sst [smem:[#allocation52_spill]] %s2796_s12 }
   0xa   :  { %2833 = sst [smem:[#allocation53_spill]] %s2797_s13 }
   0xb   :  { %2834 = sst [smem:[#allocation54_spill]] %s2798_s14 }
   0xc   :  { %2835 = sst [smem:[#allocation55_spill]] %s2799_s15 }
   0xd   :  { %2836 = sst [smem:[#allocation56_spill]] %s2800_s16 }
   0xe   :  { %2837 = sst [smem:[#allocation57_spill]] %s2801_s17 }
   0xf   :  { %2838 = sst [smem:[#allocation58_spill]] %s2802_s18 }
  0x10   :  { %2839 = sst [smem:[#allocation59_spill]] %s2803_s19 }
  0x11   :  { %s2840_s20 = sld [smem:[#allocation44_spill]] }
  0x17   :  { %s25_s17 = sshll.u32 %s2840_s20, 4  ;;  %s2191_s20 = smov [#allocation9]   ;;  %s26_s17 = int_to_ptr.vmem [resolvable:$true] %s25_s17 }
  0x18   :  { %28 = dma.vmem_to_smem %s26_s17, 16, %s2187_s6, [#allocation4] }
  0x19   :  { %33 = dma.hbm_to_smem %s31_s22, 16, %s2188_s23, [#allocation4] }
  0x1a   :  { %38 = dma.hbm_to_smem %s36_s7, 16, %s2189_s29, [#allocation4] }
  0x1b   :  { %43 = dma.hbm_to_smem %s41_s28, 16, %s2190_s0, [#allocation4] }
  0x1c   :  { %s45_s17 = sshll.u32 %s2807_s4, 4  ;;  %s46_s17 = int_to_ptr.hbm [resolvable:$true] %s45_s17 }
  0x1d   :  { %48 = dma.hbm_to_smem %s46_s17, 16, %s2191_s20, [#allocation4] }
  0x1e   :  { %2109 = dma.done.wait [#allocation4], 80 }
  0x1f   :  { %2110 = vsyncadd [#allocation4], 4294967216 }
  0x20   :  { %51 = sfence }
  0x21   :  { %52 = vsyncpa [#allocation11], 0 }
  0x22   :  { %54 = vsyncpa [#allocation11 + $0x1], 0 }
  0x23   :  { %55 = vsyncpa [#allocation15], 0 }
  0x24   :  { %57 = vsyncpa [#allocation15 + $0x1], 0 }
  0x25   :  { %58 = vsyncpa [#allocation18], 0 }
  0x26   :  { %59 = vsyncpa [#allocation21], 0 }
  0x27   :  { %60 = vsyncpa [#allocation13], 0 }
  0x28   :  { %61 = vsyncpa [#allocation12], 0 }
  0x29   :  { %63 = vsyncpa [#allocation12 + $0x1], 0  ;;  %s2322_s2 = smov 0   ;;  %s2324_s3 = smov 0  }
  0x2a   :  { %s2326_s4 = smov 0   ;;  %s2328_s21 = smov 0  }
  0x2b   :  { %s2330_s5 = smov 0   ;;  %s2332_s22 = smov 0  }
  0x2c   :  { %s2334_s6 = smov 0   ;;  %s2336_s23 = smov 0  }
  0x2d   :  { %s2338_s24 = smov 0   ;;  %s2340_s25 = smov 0  }
  0x2e   :  { %s2342_s7 = smov 0   ;;  %s2344_s26 = smov 0  }
  0x2f LB: > { %2841 = sst [smem:[#allocation37_spill]] %s2141_s2  ;;  %s2383_s27 = sadd.s32 4294967295, %s2185_s26   ;;  %s2185_s26 = sphi %s2344_s26, %s69_s26   ;;  %s2181_s7 = sphi %s2342_s7, %s2905_s7   ;;  %s2177_s25 = sphi %s2340_s25, %s2904_s25   ;;  %s2173_s24 = sphi %s2338_s24, %s2903_s24   ;;  %s2169_s23 = sphi %s2336_s23, %s2902_s23   ;;  %s2165_s6 = sphi %s2334_s6, %s2901_s6   ;;  %s2161_s22 = sphi %s2332_s22, %s2900_s22   ;;  %s2157_s5 = sphi %s2330_s5, %s2899_s5   ;;  %s2153_s21 = sphi %s2328_s21, %s2898_s21   ;;  %s2149_s4 = sphi %s2326_s4, %s2893_s4   ;;  %s2145_s3 = sphi %s2324_s3, %s2897_s3   ;;  %s2141_s2 = sphi %s2322_s2, %s2896_s2  }
  0x30   : > { %2842 = sst [smem:[#allocation38_spill]] %s2149_s4  ;;  %s1461_s28 = sadd.s32 4294967294, %s2185_s26  }
  0x31   : > { %p2821_p0 = scmp.eq.s32.totalorder %s2383_s27, 0  ;;  %p419_p1 = scmp.ne.s32.totalorder %s2149_s4, %s2145_s3 }
  0x32   : > { %p420_p2 = scmp.eq.s32.totalorder %s2383_s27, 1  ;;  %p425_p3 = scmp.ne.s32.totalorder %s2145_s3, %s2141_s2 }
  0x33   : > { %p426_p4 = scmp.eq.s32.totalorder %s1461_s28, 1  ;;  %p1462_p6 = scmp.ge.s32.totalorder %s2185_s26, 1 }
  0x34   : > { %p2392_p5 = por %p420_p2, %p419_p1  ;;  %p433_p8 = scmp.lt.s32.totalorder %s2185_s26, 3 }
  0x35   : > { %p2397_p7 = por %p426_p4, %p425_p3  ;;  %s2847_s8 = sld [smem:[#allocation48_spill]] }
  0x36   : > { %s2843_s29 = scalar_select %p2392_p5, 1, 0 }
  0x37   : > { %s2845_s0 = scalar_select %p2397_p7, 1, 0 }
  0x38   : > { %2844 = sst [smem:[#allocation39_spill]] %s2843_s29  ;;  %p2405_p9 = pnand %p1462_p6, %p433_p8 }
  0x39   : > { %2846 = sst [smem:[#allocation40_spill]] %s2845_s0  ;;  %s2192_s28 = smov [#allocation16]  }
  0x3a   : > { %p1587_p10 = pneg %p2405_p9  ;;  %s446_s2 = sshll.u32 %s2192_s28, 4  ;;  %s447_s2 = int_to_ptr.vmem [resolvable:$true] %s446_s2 }
  0x3b   : > { %s444_s17 = sshll.u32 %s2847_s8, 4  ;;  %s2850_s10 = sld [smem:[#allocation50_spill]]  ;;  %s445_s17 = int_to_ptr.hbm [resolvable:$true] %s444_s17 }
  0x3c   : > { %p2413_p11 = pnand %p1587_p10, %p2821_p0  ;;  %s2193_s0 = smov 64  }
  0x3d   : > { %s2194_s29 = smov 4   ;;  %s2195_s28 = smov [#allocation17]  }
  0x3e   : > { %1590 = dma.hbm_to_vmem [thread:$0]  (!%p2413_p11), %s445_s17, 512, %s447_s2, [#allocation15], %s2193_s0, %s2193_s0, %s2194_s29  }
  0x3f   : > { %s463_s18 = sshll.u32 %s2195_s28, 4  ;;  %s2851_s12 = sld [smem:[#allocation52_spill]]  ;;  %s464_s18 = int_to_ptr.vmem [resolvable:$true] %s463_s18 }
  0x40   : > { %s2852_s14 = sld [smem:[#allocation54_spill]]  ;;  %s2196_s13 = smov [#allocation19]  }
  0x41   : > { %s461_s8 = sshll.u32 %s2850_s10, 4  ;;  %s480_s2 = sshll.u32 %s2196_s13, 4  ;;  %s462_s8 = int_to_ptr.hbm [resolvable:$true] %s461_s8  ;;  %s481_s2 = int_to_ptr.vmem [resolvable:$true] %s480_s2 }
  0x42   : > { %1593 = dma.hbm_to_vmem [thread:$0]  (!%p2413_p11), %s462_s8, 512, %s464_s18, [#allocation18], %s2193_s0, %s2193_s0, %s2194_s29  }
  0x43   : > { %s2197_s11 = smov [#allocation20]   ;;  %s2853_s16 = sld [smem:[#allocation56_spill]] }
  0x44   : > { %s497_s15 = sshll.u32 %s2197_s11, 4  ;;  %s2198_s13 = smov [#allocation22]   ;;  %s498_s15 = int_to_ptr.vmem [resolvable:$true] %s497_s15 }
  0x45   : > { %s478_s9 = sshll.u32 %s2851_s12, 4  ;;  %s85_s28 = sld [smem:[#allocation5 + %s2181_s7]]  ;;  %s479_s9 = int_to_ptr.hbm [resolvable:$true] %s478_s9 }
  0x46   : > { %s495_s10 = sshll.u32 %s2852_s14, 4  ;;  %p97_p1 = scmp.ne.s32.totalorder %s2173_s24, %s2169_s23  ;;  %s496_s10 = int_to_ptr.hbm [resolvable:$true] %s495_s10 }
  0x47   : > { %1596 = dma.hbm_to_vmem [thread:$0]  (!%p2413_p11), %s479_s9, 512, %s481_s2, [#allocation18], %s2193_s0, %s2193_s0, %s2194_s29  }
  0x48   : > { %1599 = dma.hbm_to_vmem [thread:$0]  (!%p2413_p11), %s496_s10, 512, %s498_s15, [#allocation21], %s2193_s0, %s2193_s0, %s2194_s29  }
  0x49   : > { %s513_s17 = sshll.u32 %s2853_s16, 4  ;;  %s78_s9 = sadd.s32 1, %s2181_s7  ;;  %s514_s17 = int_to_ptr.vmem [resolvable:$true] %s513_s17 }
  0x4a   : > { %1602 = dma.vmem_to_smem (!%p2413_p11), %s514_s17, 32, %s2198_s13, [#allocation13]  }
  0x4b   : > { %p79_p13 = scmp.ge.s32.totalorder %s78_s9, 2  ;;  %p98_p2 = scmp.eq.s32.totalorder %s2185_s26, 0 }
  0x4c   : > { %p103_p3 = scmp.ne.s32.totalorder %s2169_s23, %s2165_s6  ;;  %s409_s1 = sadd.s32 1, %s2149_s4 }
  0x4d   : > { %s2907_s9 = smov (%p79_p13, %s78_s9), 0  ;;  %p2822_p6 = scmp.lt.s32.totalorder %s2185_s26, 2 }
  0x4e   : > { %2854 = sst [smem:[#allocation41_spill]] %s2907_s9  ;;  %p2453_p4 = por %p2821_p0, %p103_p3 }
  0x4f   : > { %s86_s10 = sld [smem:[#allocation5 + %s2907_s9]]  ;;  %s2818_s0 = sand.u32 1, %s2173_s24  }
  0x50   : > { %s402_s29 = sld [smem:[#allocation6 + %s2181_s7]]  ;;  %p2462_p8 = por %p98_p2, %p97_p1 }
  0x51   : > { %s403_s6 = sld [smem:[#allocation6 + %s2907_s9]]  ;;  %s90_s2 = sadd.s32 1, %s2173_s24 }
  0x52   : > { %s1469_s11 = sshll.u32 %s2818_s0, 2  ;;  %p2474_p10 = pnand %p2822_p6, %p2462_p8 }
  0x53   : > { %s534_s18 = scalar_lea.vmem [#allocation10], %s1469_s11  ;;  %s113_s11 = sld [smem:[#allocation6 + %s2181_s7]] }
  0x54   : > { %s2478_s17 = sshll.u32 %s534_s18, 4  ;;  %p127_p1 = scmp.ne.s32.totalorder %s2161_s22, %s2157_s5  ;;  %s544_s17 = int_to_ptr.vmem [resolvable:$true] %s2478_s17 }
  0x55   : > { %s87_s8 = ssub.s32 %s85_s28, %s86_s10  ;;  %p133_p3 = scmp.ne.s32.totalorder %s2157_s5, %s2153_s21 }
  0x56   : > { %p88_p11 = scmp.eq.s32.totalorder %s87_s8, 0  ;;  %s114_s8 = sld [smem:[#allocation6 + %s2907_s9]] }
  0x57   : > { %s1565_s13 = scalar_select %p2462_p8, [#allocation5], [#allocation24] }
  0x58   : > { %s2483_s0 = scalar_select %p88_p11, %s2173_s24, %s90_s2  }
  0x59   : > { %s404_s12 = ssub.s32 %s402_s29, %s403_s6  ;;  %s2909_s13 = smov (!%p2822_p6, %s1565_s13), [#allocation27] }
  0x5a   : > { %2858 = sst [smem:[#allocation42_spill]] %s2483_s0  ;;  %p407_p13 = scmp.eq.s32.totalorder %s404_s12, 0 }
  0x5b   : > { %s1566_s14 = scalar_select %p2462_p8, %s2181_s7, 0 }
  0x5c   : > { %s2489_s28 = scalar_select %p407_p13, %s2149_s4, %s409_s1  }
  0x5d   : > { %s2911_s14 = smov (!%p2822_p6, %s1566_s14), 0  ;;  %s120_s2 = sadd.s32 1, %s2161_s22 }
  0x5e   : > { %2859 = sst [smem:[#allocation43_spill]] %s2489_s28  ;;  %p2505_p11 = por %p133_p3, %p2821_p0 }
  0x5f   : > { %s535_s10 = sld [smem:[%s2909_s13 + %s2911_s14]]  ;;  %s552_s29 = sand.u32 1, %s2161_s22  }
  0x60   : > { %s2861_s18 = sld [smem:[#allocation45_spill]]  ;;  %p2515_p8 = por %p127_p1, %p98_p2 }
  0x61   : > { %s115_s13 = ssub.s32 %s113_s11, %s114_s8  ;;  %s2864_s0 = sand.u32 1, %s2173_s24  }
  0x62   : > { %p2519_p13 = scmp.eq.s32.totalorder %s115_s13, 0  ;;  %s531_s28 = scalar_lea.sflag [#allocation11], %s2864_s0 }
  0x63   : > { %p1977_p12 = pneg %p2474_p10 }
  0x65   : > { %s1470_s1 = sshll.u32 %s535_s10, 2 }
  0x66   : > { %s539_s16 = scalar_lea.hbm %s2861_s18, %s1470_s1 }
  0x67   : > { %s541_s21 = sshll.u32 %s539_s16, 4  ;;  %s1980_s16 = scalar_lea.hbm %s2861_s18, 8  ;;  %s542_s21 = int_to_ptr.hbm [resolvable:$true] %s541_s21 }
  0x68   : > { %s1973_s10 = sshra.s32 %s542_s21, 4  ;;  %s1974_s10 = int_to_ptr.hbm [resolvable:$true] %s1973_s10 }
  0x69   : > { %s1975_s4 = scalar_lea.hbm %s1974_s10, 4  ;;  %p1981_p1 = scmp.lt.s32.totalorder %s1974_s10, %s2861_s18 }
  0x6a   : > { %p1976_p3 = scmp.ne.s32.totalorder %s1974_s10, %s1975_s4  ;;  %p1982_p6 = scmp.lt.s32.totalorder %s1980_s16, %s1975_s4 }
  0x6c   : > { %p1978_p0 = pnand %p1977_p12, %p1976_p3  ;;  %p1983_p7 = por %p1982_p6, %p1981_p1 }
  0x6e   : > { %p1979_p2 = pneg %p1978_p0 }
  0x70   : > { %p1984_p5 = pnand %p1983_p7, %p1979_p2 }
  0x72   : > { %1987 = shalt.err (!%p1984_p5)
}
  0x73   : > { %1608 = dma.hbm_to_vmem [thread:$0]  (!%p2474_p10), %s542_s21, 64, %s544_s17, %s531_s28  }
  0x74   : > { %s2538_s0 = scalar_select %p2519_p13, %s2161_s22, %s120_s2  }
  0x75   : > { %s1471_s4 = sshll.u32 %s552_s29, 2  ;;  %p2865_p0 = scmp.lt.s32.totalorder %s2185_s26, 2 }
  0x76   : > { %s1568_s15 = scalar_select %p2515_p8, [#allocation6], [#allocation25] }
  0x77   : > { %p2544_p5 = pnand %p2865_p0, %p2515_p8  ;;  %p2867_p7 = pmov %p2865_p0 }
  0x78   : > { %s1569_s13 = scalar_select %p2515_p8, %s2181_s7, 0 }
  0x79   : > { %s2913_s15 = smov (!%p2867_p7, %s1568_s15), [#allocation28]  ;;  %p2868_p12 = pmov %p2865_p0 }
  0x7a   : > { %s550_s9 = sand.u32 1, %s2185_s26   ;;  %s554_s28 = scalar_lea.vmem [#allocation14], %s1471_s4 }
  0x7b   : > { %s2915_s13 = smov (!%p2868_p12, %s1569_s13), 0  ;;  %s564_s2 = sshll.u32 %s554_s28, 4  ;;  %s565_s2 = int_to_ptr.vmem [resolvable:$true] %s564_s2 }
  0x7c   : > { %s555_s17 = sld [smem:[%s2913_s15 + %s2915_s13]]  ;;  %s551_s11 = scalar_lea.sflag [#allocation15], %s550_s9 }
  0x7d   : > { %s2869_s1 = sld [smem:[#allocation46_spill]]  ;;  %p2007_p10 = pneg %p2544_p5 }
  0x82   : > { %s1472_s29 = sshll.u32 %s555_s17, 2 }
  0x83   : > { %s560_s30 = scalar_lea.hbm %s2869_s1, %s1472_s29  ;;  %s2010_s13 = scalar_lea.hbm %s2869_s1, 8 }
  0x84   : > { %s562_s16 = sshll.u32 %s560_s30, 4  ;;  %s563_s16 = int_to_ptr.hbm [resolvable:$true] %s562_s16 }
  0x85   : > { %s2003_s14 = sshra.s32 %s563_s16, 4  ;;  %s2004_s14 = int_to_ptr.hbm [resolvable:$true] %s2003_s14 }
  0x86   : > { %s2005_s8 = scalar_lea.hbm %s2004_s14, 4  ;;  %p2011_p3 = scmp.lt.s32.totalorder %s2004_s14, %s2869_s1 }
  0x87   : > { %p2006_p6 = scmp.ne.s32.totalorder %s2004_s14, %s2005_s8  ;;  %p2012_p2 = scmp.lt.s32.totalorder %s2010_s13, %s2005_s8 }
  0x89   : > { %p2008_p8 = pnand %p2007_p10, %p2006_p6  ;;  %p2013_p1 = por %p2012_p2, %p2011_p3 }
  0x8b   : > { %p2009_p13 = pneg %p2008_p8 }
  0x8d   : > { %p2014_p0 = pnand %p2013_p1, %p2009_p13 }
  0x8f   : > { %2017 = shalt.err (!%p2014_p0)
}
  0x90   : > { %1613 = dma.hbm_to_vmem [thread:$0]  (!%p2544_p5), %s563_s16, 64, %s565_s2, %s551_s11  }
  0x91   : > { %583 = sbr.rel (%p2405_p9) target bundleno = 2028 (0x7ec), region = 76  ;;  %s585_s9 = sand.u32 (!%p2405_p9), 1, %s2169_s23  }
  0x92   : > { %s1474_s29 = sshll.u32 (!%p2405_p9), %s585_s9, 2  ;;  %s586_s21 = scalar_lea.sflag (!%p2405_p9), [#allocation11], %s585_s9 }
  0x93   : > { %s589_s10 = scalar_lea.vmem (!%p2405_p9), [#allocation10], %s1474_s29 }
  0x96   : > { %2112 = dma.done.wait (%p2453_p4), %s586_s21, 64  }
  0x97   : > { %2114 = vsyncadd (%p2453_p4), %s586_s21, 4294967232  ;;  %s595_s30 = sand.u32 1, %s2383_s27   ;;  %s597_s6 = sand.u32 1, %s2157_s5  }
  0x98   : > { %s1475_s2 = sshll.u32 %s597_s6, 2  ;;  %s596_s16 = scalar_lea.sflag [#allocation15], %s595_s30 }
  0x99   : > { %s599_s20 = scalar_lea.vmem [#allocation14], %s1475_s2 }
  0x9a   : > { %2116 = dma.done.wait (%p2505_p11), %s596_s16, 64  }
  0x9b   : > { %2118 = vsyncadd (%p2505_p11), %s596_s16, 4294967232  ;;  %p2870_p9 = scmp.eq.s32.totalorder %s2383_s27, 0 }
  0x9d   : > { %2120 = dma.done.wait (%p2870_p9), [#allocation15], 512   ;;  %p2871_p5 = pmov %p2870_p9 }
  0x9f   : > { %2122 = vsyncadd (%p2871_p5), [#allocation15], 4294966784  ;;  %p2872_p4 = pmov %p2871_p5 }
  0xa1   : > { %2124 = dma.done.wait (%p2872_p4), [#allocation18], 1024   ;;  %p2873_p7 = pmov %p2872_p4 }
  0xa2   : > { %p2874_p12 = pmov %p2872_p4 }
  0xa3   : > { %2126 = vsyncadd (%p2873_p7), [#allocation18], 4294966272 }
  0xa4   : > { %2128 = dma.done.wait (%p2874_p12), [#allocation21], 512   ;;  %p2875_p6 = pmov %p2872_p4 }
  0xa5   : > { %p2876_p11 = pmov %p2872_p4 }
  0xa6   : > { %2130 = vsyncadd (%p2875_p6), [#allocation21], 4294966784 }
  0xa7   : > { %2132 = dma.done.wait (%p2876_p11), [#allocation13], 32   ;;  %p2877_p10 = pmov %p2872_p4 }
  0xa9   : > { %2134 = vsyncadd (%p2877_p10), [#allocation13], 4294967264 }
  0xaa   : > { %630 = sfence }
  0xab   : > { %s680_s19 = sand.u32 1, %s2145_s3   ;;  %p685_p8 = scmp.lt.s32.totalorder %s2177_s25, 1  ;;  %v697_v0 = vld [vmem:[%s589_s10] sm:$0xf]  ;;  %v2602_v1 = vld [vmem:[%s599_s20] sm:$0xf] }
  0xac   : > { %s2606_s12 = sshll.u32 %s680_s19, 2  ;;  %s694_s11 = sld [smem:[#allocation7 + %s2177_s25]] }
  0xad   : > { %s2610_s27 = sld [smem:[#allocation8 + %s2177_s25]]  ;;  %s682_s9 = scalar_lea.vmem [#allocation23], %s2606_s12 }
  0xae   : > { %s686_s14 = scalar_select %p685_p8, %s2177_s25, 1 }
  0xaf   : > { %s2614_s8 = sld [smem:[#allocation6 + %s2177_s25]] }
  0xb0   : > { %s1482_s15 = sshll.u32 %s686_s14, 1  ;;  %s2878_s17 = sld [smem:[#allocation47_spill]] }
  0xb2   : > { %p1483_p13 = scmp.ne.s32.totalorder %s694_s11, 1 }
  0xb3   : > { %s2879_s30 = sld [smem:[#allocation53_spill]] (!%p1483_p13) }
  0xb4   : > { %702 = sbr.rel (%p1483_p13) target bundleno = 327 (0x147), region = 108 }
  0xb5   : > { %s1543_s29 = sshll.u32 (!%p1483_p13), %s2614_s8, 4 }
  0xb6   : > { %s2619_s28 = scalar_lea.vmem %s2878_s17, %s1482_s15  ;;  %s705_s2 = scalar_lea.vmem (!%p1483_p13), [#allocation19], %s1543_s29 }
  0xb9   : > { %vm727_vm0 = vcmask 261120   ;;  %s710_s6 = scalar_lea.vmem %s2879_s30, %s2614_s8  ;;  %v2199_v2 = vmov 0.0   ;;  %v1545_v3 = vld [vmem:[%s705_s2 + $0x8] sm:$0xff]  ;;  %v1544_v4 = vld [vmem:[%s705_s2] sm:$0xff]  ;;  %vm745_vm1 = vcmask 257024  }
  0xba   : > { %747 = vst.msk [vmem:[#allocation3] sm:$0xff] %vm727_vm0, %v2199_v2  ;;  %737 = vmatpush.bf16.msra.mxu0 %v1545_v3  ;;  %v1746_v5 = vld [vmem:[%s710_s6] ss:$0 sm:$0xff] }
  0xbe   : > { %738 = vmatpush.bf16.msra.mxu0 %v1544_v4 }
  0xc1   : > { %1494 = vmatmul.msk.bf16.vlgmr.msra.gmra.mxu0 %vm727_vm0, %v2602_v1 }
 0x13e   : > { %v740_v6 = vpop.f32.mrf.mxu0 }
 0x13f   : > { %v741_v7 = vadd.f32 %v1746_v5, %v740_v6 }
 0x141   : > { %v744_v8 = vpack.c.bf16 %v741_v7, %v741_v7 }
 0x143   : > { %746 = vst.msk [vmem:[#allocation2] sm:$0xf] %vm745_vm1, %v744_v8 }
 0x146   : > { %v742_v9 = vpop.f32.mrf.mxu0 }
 0x147 PF: > { %s1546_s16 = sshll.u32 %s2177_s25, 4  ;;  %s2880_s14 = sld [smem:[#allocation49_spill]]  ;;  %vm772_vm2 = vcmask 261120   ;;  %vm834_vm3 = vcmask 64512   ;;  %vm880_vm4 = vcmask 1043456   ;;  %vm1118_vm5 = vcmask 130048  }
 0x148   : > { %s750_s4 = scalar_lea.vmem [#allocation16], %s1546_s16  ;;  %s791_s13 = scalar_lea.vmem [#allocation17], %s1546_s16  ;;  %v828_v35 = vld [vmem:[%s2619_s28] sm:$0x3]  ;;  %vm1120_vm6 = vcmask 195584  }
 0x149   : > { %v1548_v10 = vld [vmem:[%s750_s4 + $0x8] sm:$0xff]  ;;  %v1547_v12 = vld [vmem:[%s750_s4] sm:$0xff]  ;;  %s2881_s21 = sld [smem:[#allocation51_spill]]  ;;  %s2200_s30 = smov 112   ;;  %v829_v36 = vunpack.c.0.s8 %v828_v35 }
 0x14a   : > { %v1551_v11 = vld [vmem:[%s791_s13 + $0x8] sm:$0xff]  ;;  %782 = vmatpush.bf16.msra.mxu0 %v1548_v10  ;;  %v1550_v13 = vld [vmem:[%s791_s13] sm:$0xff]  ;;  %s2201_s6 = smov 120   ;;  %s2202_s2 = smov 104  }
 0x14b   : > { %819 = vmatpush.bf16.msra.mxu1 %v1551_v11  ;;  %v827_v22 = vld [vmem:[#allocation2] sm:$0xf]  ;;  %v830_v37 = vcvt.s32.f32 %v829_v36  ;;  %s2203_s28 = smov 16   ;;  %s2204_s16 = smov 8  }
 0x14c   : > { %v898_v23 = vunpack.c.l.b16 %v827_v22  ;;  %s2205_s20 = smov 24   ;;  %p1525_p3 = scmp.ne.s32.totalorder %s2610_s27, 1 }
 0x14d   : > { %s755_s15 = scalar_lea.vmem %s2880_s14, %s2177_s25  ;;  %v1516_v38 = vadd.f32 -1.0, %v830_v37  ;;  %v833_v49 = vpack.c.bf16 %v830_v37, %v830_v37  ;;  %s1552_s11 = sshll.u32 (!%p1525_p3), %s2614_s8, 4 }
 0x14e   : > { %783 = vmatpush.bf16.msra.mxu0 %v1547_v12  ;;  %v1747_v14 = vld [vmem:[%s755_s15] ss:$0 sm:$0xff]  ;;  %v899_v24 = vpack.c.b16 %v898_v23, %v898_v23  ;;  %s1128_s14 = sld [smem:[#allocation9 + %s2177_s25]] (!%p1525_p3)  ;;  %s1173_s15 = scalar_lea.vmem (!%p1525_p3), [#allocation20], %s1552_s11 }
 0x14f   : > { %820 = vmatpush.bf16.msra.mxu1 %v1550_v13  ;;  %s796_s10 = scalar_lea.vmem %s2881_s21, %s2177_s25  ;;  %v832_v39 = vmul.f32 1e+09, %v1516_v38  ;;  %v2654_v52 = vunpack.c.l.bf16 %v833_v49  ;;  %s2882_s17 = sld [smem:[#allocation55_spill]] (!%p1525_p3) }
 0x150   : > { %v1748_v26 = vld [vmem:[%s796_s10] ss:$0 sm:$0xff]  ;;  %s1526_s27 = sshll.u32 (!%p1525_p3), %s2614_s8, 7 }
 0x151   : > { %1505 = vmatmul.msk.bf16.vlgmr.msra.gmra.mxu0 %vm772_vm2, %v697_v0  ;;  %s1149_s10 = sld [smem:[#allocation22 + %s1526_s27]] (!%p1525_p3) }
 0x152   : > { %1515 = vmatmul.msk.bf16.vlgmr.msra.gmra.mxu1 %vm772_vm2, %v697_v0 }
 0x154   : > { %s1129_s21 = scvt.s32.f32 (!%p1525_p3), %s1128_s14 }
 0x155   : > { %s1178_s29 = scalar_lea.vmem (!%p1525_p3), %s2882_s17, %s2614_s8 }
 0x1ce   : > { %v785_v15 = vpop.f32.mrf.mxu0 }
 0x1cf   : > { %v786_v16 = vadd.f32 %v1747_v14, %v785_v15  ;;  %v822_v25 = vpop.f32.mrf.mxu1 }
 0x1d0   : > { %v823_v27 = vadd.f32 %v1748_v26, %v822_v25 }
 0x1d1   : > { %v789_v17 = vpack.c.bf16 %v786_v16, %v786_v16 }
 0x1d2   : > { %v2646_v29 = vpack.c.bf16 %v823_v27, %v823_v27 }
 0x1d3   : > { %v903_v18 = vunpack.c.l.b16 %v789_v17  ;;  %v839_v19 = vsel %vm834_vm3, %v789_v17, 0 }
 0x1d4   : > { %848 = vmatpush.bf16.xpose.msra.mxu2 %v839_v19  ;;  %v882_v30 = vsel %vm880_vm4, %v2646_v29, 0  ;;  %v949_v15 = vunpack.c.l.b16 %v2646_v29 }
 0x1d5   : > { %v904_v20 = vpack.c.b16 %v903_v18, %v903_v18  ;;  %891 = vmatpush.bf16.msra.mxu3 %v882_v30 }
 0x1d6   : > { %v787_v21 = vpop.f32.mrf.mxu0  ;;  %v950_v17 = vpack.c.b16 %v949_v15, %v949_v15 }
 0x1d7   : > { %974 = vrot.lane.b32.xlu2 %v904_v20, %s2200_s30  ;;  %905 = vrot.lane.b32.xlu1 %v904_v20, %s2201_s6  ;;  %v824_v28 = vpop.f32.mrf.mxu1 }
 0x1db   : > { %1517 = vmatmul.msk.bf16.vlgmr.msra.gmra.mxu2 %vm834_vm3, %v827_v22 }
 0x1df   : > { %1040 = vrot.lane.b32.xlu2 %v904_v20, %s2202_s2  ;;  %900 = vrot.lane.b32.xlu1 %v899_v24, %s2201_s6 }
 0x1e7   : > { %1038 = vrot.lane.b32.xlu1 %v899_v24, %s2202_s2 }
 0x231   : > { %v975_v31 = vpop.permute.xlu2 %974 }
 0x232   : > { %v980_v32 = vsel %vm834_vm3, %v975_v31, 0 }
 0x233   : > { %989 = vmatpush.bf16.xpose.msrb.mxu1 %v980_v32 }
 0x239   : > { %v1041_v0 = vpop.permute.xlu2 %1040 }
 0x23a   : > { %v1046_v3 = vsel %vm834_vm3, %v1041_v0, 0 }
 0x249   : > { %v906_v33 = vpop.permute.xlu1 %905 }
 0x24a   : > { %v911_v34 = vsel %vm834_vm3, %v906_v33, 0 }
 0x24b   : > { %920 = vmatpush.bf16.xpose.msrb.mxu3 %v911_v34 }
 0x251   : > { %v901_v5 = vpop.permute.xlu1 %900 }
 0x259   : > { %v1039_v6 = vpop.permute.xlu1 %1038 }
 0x25e   : > { %v850_v40 = vpop.f32.mrf.mxu2 }
 0x25f   : > { %v851_v41 = vadd.f32 %v850_v40, %v832_v39 }
 0x261   : > { %v854_v42 = vsel %vm834_vm3, %v851_v41, -inf }
 0x262   : > { %855 = vmax.xlane.f32.xlu0 %v854_v42 }
 0x266   : > { %v852_v43 = vpop.f32.mrf.mxu2 }
 0x2d5   : > { %v856_v44 = vpop.xlane.xlu0 %855 }
 0x2d6   : > { %v857_v45 = vsub.f32 %v851_v41, %v856_v44 }
 0x2d8   : > { %v858_v46 = vpack.c.bf16 %v857_v45, %v857_v45 }
 0x2da   : > { %v859_v47 = vunpack.c.l.bf16 %v858_v46 }
 0x2dc   : > { %v860_v48 = vmul.f32 1.442695, %v859_v47 }
 0x2de   : > { %1749 = vpow2.f32 %v860_v48 }
 0x2e4   : > { %v1750_v50 = vpop.eup %1749 }
 0x2e5   : > { %v862_v51 = vpack.c.bf16 %v1750_v50, %v1750_v50 }
 0x2e7   : > { %v863_v53 = vunpack.c.l.bf16 %v862_v51 }
 0x2e9   : > { %v865_v54 = vmul.f32 %v2654_v52, %v863_v53 }
 0x2eb   : > { %v866_v55 = vpack.c.bf16 %v865_v54, %v865_v54 }
 0x2ed   : > { %v867_v56 = vunpack.c.l.bf16 %v866_v55 }
 0x2ef   : > { %v868_v57 = vsel %vm834_vm3, %v867_v56, 0.0 }
 0x2f0   : > { %869 = vadd.xlane.f32.xlu0 %v868_v57 }
 0x304   : > { %972 = vrot.lane.b32.xlu0 %v899_v24, %s2200_s30 }
 0x363   : > { %v870_v58 = vpop.xlane.xlu0 %869 }
 0x364   : > { %v871_v59 = vmax.f32 %v870_v58, 1e-30 }
 0x366   : > { %1751 = vrcp.f32 %v871_v59 }
 0x36c   : > { %v1752_v60 = vpop.eup %1751 }
 0x36d   : > { %v873_v61 = vpack.c.bf16 %v1752_v60, %v1752_v60 }
 0x36f   : > { %v874_v62 = vunpack.c.l.bf16 %v873_v61 }
 0x371   : > { %v875_v63 = vmul.f32 %v874_v62, %v867_v56 }
 0x373   : > { %v876_v2 = vpack.c.bf16 %v875_v63, %v875_v63 }
 0x375   : > { %1518 = vmatmul.msk.bf16.vlgmr.msra.gmra.mxu3 %vm834_vm3, %v876_v2 }
 0x376   : > { %1055 = vmatpush.bf16.xpose.msra.mxu3 %v1046_v3  ;;  %v973_v4 = vpop.permute.xlu0 %972 }
 0x377   : > { %1521 = vmatmul.msk.bf16.vlgmr.msrb.gmra.mxu1 %vm834_vm3, %v973_v4 }
 0x385   : > { %1519 = vmatmul.msk.bf16.vlgmr.msrb.gmra.mxu3 %vm834_vm3, %v901_v5 }
 0x395   : > { %1523 = vmatmul.msk.bf16.vlgmr.msra.gmra.mxu3 %vm834_vm3, %v1039_v6 }
 0x3f4   : > { %v991_v7 = vpop.f32.mrf.mxu1 }
 0x3f5   : > { %v992_v8 = vadd.f32 %v991_v7, %v832_v39 }
 0x3f7   : > { %v995_v9 = vsel %vm834_vm3, %v992_v8, -inf }
 0x3f8   : > { %v2665_v10 = vpop.f32.mrf.mxu3  ;;  %996 = vmax.xlane.f32.xlu1 %v995_v9 }
 0x3fc   : > { %v993_v11 = vpop.f32.mrf.mxu1 }
 0x400   : > { %v895_v12 = vpop.f32.mrf.mxu3 }
 0x408   : > { %v922_v13 = vpop.f32.mrf.mxu3 }
 0x409   : > { %v923_v14 = vadd.f32 %v922_v13, %v832_v39 }
 0x40b   : > { %v926_v16 = vsel %vm834_vm3, %v923_v14, -inf }
 0x40c   : > { %927 = vmax.xlane.f32.xlu2 %v926_v16 }
 0x410   : > { %v924_v18 = vpop.f32.mrf.mxu3 }
 0x411   : > { %951 = vrot.lane.b32.xlu1 %v950_v17, %s2201_s6 }
 0x418   : > { %v1057_v19 = vpop.f32.mrf.mxu3 }
 0x419   : > { %v1058_v20 = vadd.f32 %v1057_v19, %v832_v39 }
 0x41b   : > { %v1061_v21 = vsel %vm834_vm3, %v1058_v20, -inf }
 0x41c   : > { %1062 = vmax.xlane.f32.xlu0 %v1061_v21 }
 0x420   : > { %v1059_v22 = vpop.f32.mrf.mxu3 }
 0x430   : > { %1017 = vrot.lane.b32.xlu0 %v950_v17, %s2200_s30 }
 0x46b   : > { %v997_v23 = vpop.xlane.xlu1 %996 }
 0x46c   : > { %v998_v24 = vsub.f32 %v992_v8, %v997_v23 }
 0x46e   : > { %v999_v25 = vpack.c.bf16 %v998_v24, %v998_v24 }
 0x470   : > { %v1000_v26 = vunpack.c.l.bf16 %v999_v25 }
 0x472   : > { %v1001_v27 = vmul.f32 1.442695, %v1000_v26 }
 0x474   : > { %1753 = vpow2.f32 %v1001_v27 }
 0x47a   : > { %v1754_v28 = vpop.eup %1753 }
 0x47b   : > { %v1003_v29 = vpack.c.bf16 %v1754_v28, %v1754_v28 }
 0x47d   : > { %v1004_v30 = vunpack.c.l.bf16 %v1003_v29 }
 0x47f   : > { %v928_v31 = vpop.xlane.xlu2 %927  ;;  %v1005_v32 = vmul.f32 %v1004_v30, %v2654_v52 }
 0x480   : > { %v929_v33 = vsub.f32 %v923_v14, %v928_v31 }
 0x481   : > { %v1006_v34 = vpack.c.bf16 %v1005_v32, %v1005_v32 }
 0x482   : > { %v930_v35 = vpack.c.bf16 %v929_v33, %v929_v33  ;;  %v1104_v33 = vld [vmem:[#allocation3] sm:$0xff] }
 0x483   : > { %v952_v36 = vpop.permute.xlu1 %951  ;;  %v1007_v37 = vunpack.c.l.bf16 %v1006_v34 }
 0x484   : > { %v931_v38 = vunpack.c.l.bf16 %v930_v35  ;;  %v957_v39 = vsel %vm880_vm4, %v952_v36, 0 }
 0x485   : > { %966 = vmatpush.bf16.msrb.mxu0 %v957_v39  ;;  %v1008_v40 = vsel %vm834_vm3, %v1007_v37, 0.0 }
 0x486   : > { %v932_v41 = vmul.f32 1.442695, %v931_v38  ;;  %1009 = vadd.xlane.f32.xlu2 %v1008_v40 }
 0x488   : > { %1755 = vpow2.f32 %v932_v41 }
 0x48e   : > { %v1756_v42 = vpop.eup %1755 }
 0x48f   : > { %v934_v43 = vpack.c.bf16 %v1756_v42, %v1756_v42  ;;  %v1063_v44 = vpop.xlane.xlu0 %1062 }
 0x490   : > { %v1064_v45 = vsub.f32 %v1058_v20, %v1063_v44 }
 0x491   : > { %v935_v46 = vunpack.c.l.bf16 %v934_v43 }
 0x492   : > { %v1065_v47 = vpack.c.bf16 %v1064_v45, %v1064_v45 }
 0x493   : > { %v936_v48 = vmul.f32 %v935_v46, %v2654_v52 }
 0x494   : > { %v1066_v49 = vunpack.c.l.bf16 %v1065_v47 }
 0x495   : > { %v937_v50 = vpack.c.bf16 %v936_v48, %v936_v48 }
 0x496   : > { %v1067_v51 = vmul.f32 1.442695, %v1066_v49 }
 0x497   : > { %v938_v53 = vunpack.c.l.bf16 %v937_v50 }
 0x498   : > { %1757 = vpow2.f32 %v1067_v51 }
 0x499   : > { %v939_v54 = vsel %vm834_vm3, %v938_v53, 0.0 }
 0x49a   : > { %940 = vadd.xlane.f32.xlu2 %v939_v54 }
 0x49e   : > { %v1758_v55 = vpop.eup %1757 }
 0x49f   : > { %v1069_v56 = vpack.c.bf16 %v1758_v55, %v1758_v55 }
 0x4a1   : > { %v1070_v57 = vunpack.c.l.bf16 %v1069_v56 }
 0x4a2   : > { %v1018_v58 = vpop.permute.xlu0 %1017 }
 0x4a3   : > { %v1023_v59 = vsel %vm880_vm4, %v1018_v58, 0  ;;  %v1071_v60 = vmul.f32 %v1070_v57, %v2654_v52 }
 0x4a4   : > { %1032 = vmatpush.bf16.msrb.mxu2 %v1023_v59 }
 0x4a5   : > { %v1072_v61 = vpack.c.bf16 %v1071_v60, %v1071_v60 }
 0x4a7   : > { %v1073_v62 = vunpack.c.l.bf16 %v1072_v61 }
 0x4a9   : > { %v1074_v63 = vsel %vm834_vm3, %v1073_v62, 0.0 }
 0x4aa   : > { %1075 = vadd.xlane.f32.xlu2 %v1074_v63 }
 0x4c2   : > { %1083 = vrot.lane.b32.xlu2 %v950_v17, %s2202_s2 }
 0x4f9   : > { %v1010_v0 = vpop.xlane.xlu2 %1009 }
 0x4fa   : > { %v1011_v2 = vmax.f32 %v1010_v0, 1e-30 }
 0x4fc   : > { %1759 = vrcp.f32 %v1011_v2 }
 0x502   : > { %v1760_v3 = vpop.eup %1759 }
 0x503   : > { %v1013_v4 = vpack.c.bf16 %v1760_v3, %v1760_v3 }
 0x505   : > { %v1014_v5 = vunpack.c.l.bf16 %v1013_v4 }
 0x507   : > { %v1015_v6 = vmul.f32 %v1014_v5, %v1007_v37 }
 0x509   : > { %v1016_v7 = vpack.c.bf16 %v1015_v6, %v1015_v6 }
 0x50b   : > { %1522 = vmatmul.msk.bf16.vlgmr.msrb.gmra.mxu2 %vm834_vm3, %v1016_v7 }
 0x50d   : > { %v941_v8 = vpop.xlane.xlu2 %940 }
 0x50e   : > { %v942_v52 = vmax.f32 %v941_v8, 1e-30 }
 0x510   : > { %1761 = vrcp.f32 %v942_v52 }
 0x516   : > { %v1762_v9 = vpop.eup %1761 }
 0x517   : > { %v944_v11 = vpack.c.bf16 %v1762_v9, %v1762_v9 }
 0x519   : > { %v945_v12 = vunpack.c.l.bf16 %v944_v11 }
 0x51b   : > { %v946_v13 = vmul.f32 %v945_v12, %v938_v53 }
 0x51d   : > { %v947_v14 = vpack.c.bf16 %v946_v13, %v946_v13  ;;  %v1076_v15 = vpop.xlane.xlu2 %1075 }
 0x51e   : > { %v1077_v16 = vmax.f32 %v1076_v15, 1e-30 }
 0x51f   : > { %1520 = vmatmul.msk.bf16.vlgmr.msrb.gmra.mxu0 %vm834_vm3, %v947_v14 }
 0x520   : > { %1763 = vrcp.f32 %v1077_v16 }
 0x525   : > { %v1084_v17 = vpop.permute.xlu2 %1083 }
 0x526   : > { %v1764_v18 = vpop.eup %1763  ;;  %v1089_v19 = vsel %vm880_vm4, %v1084_v17, 0 }
 0x527   : > { %v1079_v20 = vpack.c.bf16 %v1764_v18, %v1764_v18  ;;  %1098 = vmatpush.bf16.msra.mxu0 %v1089_v19 }
 0x529   : > { %v1080_v21 = vunpack.c.l.bf16 %v1079_v20 }
 0x52b   : > { %v1081_v22 = vmul.f32 %v1080_v21, %v1073_v62 }
 0x52d   : > { %v1082_v23 = vpack.c.bf16 %v1081_v22, %v1081_v22 }
 0x52f   : > { %1524 = vmatmul.msk.bf16.vlgmr.msra.gmra.mxu0 %vm834_vm3, %v1082_v23 }
 0x58e   : > { %v1034_v24 = vpop.f32.mrf.mxu2 }
 0x58f   : > { %1110 = vrot.lane.b32.xlu0 %v1034_v24, %s2203_s28 }
 0x596   : > { %v1036_v25 = vpop.f32.mrf.mxu2 }
 0x59c   : > { %v968_v26 = vpop.f32.mrf.mxu0 }
 0x59d   : > { %1106 = vrot.lane.b32.xlu1 %v968_v26, %s2204_s16  ;;  %s2883_s16 = sld [smem:[#allocation57_spill]] (!%p1525_p3) }
 0x5a4   : > { %v970_v27 = vpop.f32.mrf.mxu0 }
 0x5ac   : > { %v1100_v28 = vpop.f32.mrf.mxu0 }
 0x5ad   : > { %1114 = vrot.lane.b32.xlu1 %v1100_v28, %s2205_s20  ;;  %s1245_s20 = scalar_lea.vmem (!%p1525_p3), %s2883_s16, %s2614_s8 }
 0x5b4   : > { %v1102_v29 = vpop.f32.mrf.mxu0 }
 0x601   : > { %v1111_v32 = vpop.permute.xlu0 %1110 }
 0x60f   : > { %v1107_v30 = vpop.permute.xlu1 %1106 }
 0x610   : > { %v1117_v31 = vsel %vm834_vm3, %v2665_v10, %v1107_v30 }
 0x611   : > { %v1119_v35 = vsel %vm1118_vm5, %v1117_v31, %v1111_v32 }
 0x61f   : > { %v1115_v34 = vpop.permute.xlu1 %1114  ;;  %1127 = sbr.rel (%p1525_p3) target bundleno = 1997 (0x7cd), region = 112 }
 0x620   : > { %v1121_v36 = vsel %vm1120_vm6, %v1119_v35, %v1115_v34 }
 0x621   : > { %v1122_v37 = vadd.f32 %v1121_v36, %v1104_v33 }
 0x623   : > { %1123 = vst.msk [vmem:[#allocation3] sm:$0xff] %vm772_vm2, %v1122_v37 }
 0x624   : > { %v1554_v10 = vld [vmem:[%s1173_s15 + $0x8] sm:$0xff]  ;;  %v1553_v38 = vld [vmem:[%s1173_s15] sm:$0xff]  ;;  %v1130_v39 = vstv %s1129_s21  ;;  %v1150_v54 = vstv %s1149_s10  ;;  %v1212_v7 = vunpack.c.l.bf16 %v2602_v1  ;;  %s2884_s15 = sld [smem:[#allocation58_spill]]  ;;  %v2206_v15 = vmov 32.0  }
 0x625   : > { %1204 = vmatpush.bf16.msra.mxu0 %v1554_v10  ;;  %1768 = vrcp.f32 %v1130_v39  ;;  %v1143_v42 = vand.u32 2147483648, %v1130_v39  ;;  %vm1137_vm7 = vweird.f32 %v1130_v39  ;;  %v1141_v44 = vand.u32 2147483647, %v1130_v39  ;;  %v1765_v5 = vld [vmem:[%s1178_s29] ss:$0 sm:$0xff] }
 0x626   : > { %v1527_v55 = vmul.f32 -1.442695, %v1150_v54  ;;  %v1766_v35 = vld [vmem:[%s1245_s20] ss:$0 sm:$0xff]  ;;  %vm1258_vm3 = vcmask 257024  }
 0x627   : > { %v1144_v46 = vor.u32 1.1754944e-38, %v1143_v42  ;;  %vm1142_vm10 = vcmp.eq.f32.partialorder %v1141_v44, 8.507059e+37 }
 0x628   : > { %1770 = vpow2.f32 %v1527_v55 }
 0x629   : > { %1205 = vmatpush.bf16.msra.mxu0 %v1553_v38 }
 0x62a   : > { %v1131_v48 = vld [vmem:[#allocation3] sm:$0xff]  ;;  %s1251_s4 = scalar_lea.vmem %s2884_s15, %s2614_s8 }
 0x62b   : > { %v1769_v40 = vpop.eup %1768  ;;  %v1767_v37 = vld [vmem:[%s1251_s4] ss:$0 sm:$0xff] }
 0x62c   : > { %v1133_v41 = vmul.f32 %v1769_v40, %v1130_v39  ;;  %vm1138_vm8 = vweird.f32 %v1769_v40 }
 0x62d   : > { %vm1139_vm9 = vmor %vm1137_vm7, %vm1138_vm8 }
 0x62e   : > { %v1134_v43 = vsub.f32 1.0, %v1133_v41  ;;  %v1771_v56 = vpop.eup %1770 }
 0x62f   : > { %v1154_v57 = vadd.f32 1.0, %v1771_v56 }
 0x630   : > { %v1135_v45 = vmul.f32 %v1769_v40, %v1134_v43 }
 0x631   : > { %1772 = vrcp.f32 %v1154_v57  ;;  %vm1160_vm11 = vweird.f32 %v1154_v57  ;;  %v1166_v62 = vand.u32 2147483648, %v1154_v57  ;;  %v1164_v0 = vand.u32 2147483647, %v1154_v57 }
 0x632   : > { %v1136_v47 = vadd.f32 %v1769_v40, %v1135_v45  ;;  %1774 = vrcp.f32 %v2206_v15 }
 0x633   : > { %v1167_v2 = vor.u32 1.1754944e-38, %v1166_v62  ;;  %vm1165_vm14 = vcmp.eq.f32.partialorder %v1164_v0, 8.507059e+37 }
 0x634   : > { %v1140_v49 = vsel %vm1139_vm9, %v1769_v40, %v1136_v47 }
 0x635   : > { %v1145_v50 = vsel %vm1142_vm10, %v1144_v46, %v1140_v49 }
 0x636   : > { %v1147_v51 = vmul.f32 %v1145_v50, %v1131_v48 }
 0x637   : > { %v1773_v58 = vpop.eup %1772 }
 0x638   : > { %v1170_v53 = vpack.c.bf16 %v1147_v51, %v1147_v51  ;;  %v1156_v59 = vmul.f32 %v1773_v58, %v1154_v57  ;;  %vm1161_vm12 = vweird.f32 %v1773_v58  ;;  %v1775_v1 = vpop.eup %1774 }
 0x639   : > { %vm1162_vm13 = vmor %vm1160_vm11, %vm1161_vm12  ;;  %v1220_v16 = vmul.f32 32.0, %v1775_v1  ;;  %vm1224_vm15 = vweird.f32 %v1775_v1 }
 0x63a   : > { %1538 = vmatmul.msk.bf16.vlgmr.msra.gmra.mxu0 %vm772_vm2, %v1170_v53  ;;  %v1157_v60 = vsub.f32 1.0, %v1156_v59 }
 0x63b   : > { %v1221_v17 = vsub.f32 1.0, %v1220_v16 }
 0x63c   : > { %v1158_v61 = vmul.f32 %v1773_v58, %v1157_v60 }
 0x63d   : > { %v1222_v18 = vmul.f32 %v1775_v1, %v1221_v17 }
 0x63e   : > { %v1159_v63 = vadd.f32 %v1773_v58, %v1158_v61 }
 0x63f   : > { %v1223_v19 = vadd.f32 %v1775_v1, %v1222_v18 }
 0x640   : > { %v1163_v3 = vsel %vm1162_vm13, %v1773_v58, %v1159_v63 }
 0x641   : > { %v1168_v4 = vsel %vm1165_vm14, %v1167_v2, %v1163_v3  ;;  %v1225_v20 = vsel %vm1224_vm15, %v1775_v1, %v1223_v19 }
 0x642   : > { %v1213_v6 = vsub.f32 1.0, %v1168_v4 }
 0x644   : > { %v1214_v9 = vmul.f32 %v1213_v6, %v1212_v7 }
 0x6b7   : > { %v1207_v8 = vpop.f32.mrf.mxu0 }
 0x6b8   : > { %v1208_v52 = vadd.f32 %v1765_v5, %v1207_v8 }
 0x6ba   : > { %v1211_v11 = vmul.f32 %v1208_v52, %v1168_v4 }
 0x6bc   : > { %v1215_v12 = vadd.f32 %v1214_v9, %v1211_v11 }
 0x6be   : > { %v1216_v13 = vsel %vm772_vm2, %v1215_v12, 0.0 }
 0x6bf   : > { %v1209_v14 = vpop.f32.mrf.mxu0  ;;  %1217 = vadd.xlane.f32.xlu0 %v1216_v13 }
 0x732   : > { %v1218_v21 = vpop.xlane.xlu0 %1217 }
 0x733   : > { %v1226_v22 = vmul.f32 %v1225_v20, %v1218_v21 }
 0x735   : > { %v1227_v23 = vsub.f32 %v1215_v12, %v1226_v22 }
 0x737   : > { %v1228_v24 = vmul.f32 %v1227_v23, %v1227_v23 }
 0x739   : > { %v1229_v25 = vsel %vm772_vm2, %v1228_v24, 0.0 }
 0x73a   : > { %1230 = vadd.xlane.f32.xlu0 %v1229_v25 }
 0x7ad   : > { %v1231_v26 = vpop.xlane.xlu0 %1230 }
 0x7ae   : > { %v1232_v27 = vmul.f32 %v1231_v26, %v1225_v20 }
 0x7b0   : > { %v1233_v28 = vadd.f32 1e-05, %v1232_v27 }
 0x7b2   : > { %1776 = vrsqrt.f32 %v1233_v28  ;;  %vm1240_vm1 = vweird.f32 %v1233_v28 }
 0x7b8   : > { %v1777_v29 = vpop.eup %1776 }
 0x7b9   : > { %v1235_v30 = vmul.f32 %v1777_v29, %v1233_v28  ;;  %vm1241_vm0 = vweird.f32 %v1777_v29 }
 0x7ba   : > { %vm1242_vm2 = vmor %vm1240_vm1, %vm1241_vm0 }
 0x7bb   : > { %v1236_v31 = vmul.f32 %v1777_v29, %v1235_v30 }
 0x7bd   : > { %v1237_v32 = vmul.f32 0.5, %v1236_v31 }
 0x7bf   : > { %v1238_v33 = vsub.f32 1.5, %v1237_v32 }
 0x7c1   : > { %v1239_v34 = vmul.f32 %v1777_v29, %v1238_v33 }
 0x7c3   : > { %v1243_v36 = vsel %vm1242_vm2, %v1777_v29, %v1239_v34 }
 0x7c4   : > { %v1244_v10 = vmul.f32 %v1243_v36, %v1227_v23 }
 0x7c6   : > { %v1250_v38 = vmul.f32 %v1766_v35, %v1244_v10 }
 0x7c8   : > { %v1256_v39 = vadd.f32 %v1767_v37, %v1250_v38 }
 0x7ca   : > { %v1257_v40 = vpack.c.bf16 %v1256_v39, %v1256_v39 }
 0x7cc   : > { %1259 = vst.msk [vmem:[%s682_s9] sm:$0xf] %vm1258_vm3, %v1257_v40 }
 0x7cd PF: > { %s2885_s10 = sld [smem:[#allocation39_spill]]  ;;  %s1275_s6 = sshll.u32 %s682_s9, 4  ;;  %s1276_s6 = int_to_ptr.vmem [resolvable:$true] %s1275_s6 }
 0x7ce   : > { %s2887_s11 = sld [smem:[#allocation59_spill]]  ;;  %s1261_s13 = scalar_lea.sflag [#allocation12], %s680_s19 }
 0x7d3   : > { %p2886_p2 = scmp.ne.s32.totalorder %s2885_s10, 0 }
 0x7d4   : > { %s2053_s9 = scalar_lea.hbm %s2887_s11, 8 }
 0x7d5   : > { %s1583_s30 = scalar_select %p2886_p2, [#allocation6], [#allocation26] }
 0x7d6   : > { %s2917_s25 = smov (!%p2886_p2, %s2177_s25), 0 }
 0x7d7   : > { %s1268_s8 = sld [smem:[%s1583_s30 + %s2917_s25]] }
 0x7dd   : > { %s1540_s2 = sshll.u32 %s1268_s8, 2 }
 0x7de   : > { %s1273_s14 = scalar_lea.hbm %s2887_s11, %s1540_s2 }
 0x7df   : > { %s1277_s4 = sshll.u32 %s1273_s14, 4  ;;  %s1278_s4 = int_to_ptr.hbm [resolvable:$true] %s1277_s4 }
 0x7e0   : > { %s2047_s29 = sshra.s32 %s1278_s4, 4  ;;  %s2048_s29 = int_to_ptr.hbm [resolvable:$true] %s2047_s29 }
 0x7e1   : > { %s2049_s21 = scalar_lea.hbm %s2048_s29, 4  ;;  %p2054_p5 = scmp.lt.s32.totalorder %s2048_s29, %s2887_s11 }
 0x7e2   : > { %p2050_p1 = scmp.ne.s32.totalorder %s2048_s29, %s2049_s21  ;;  %p2055_p4 = scmp.lt.s32.totalorder %s2053_s9, %s2049_s21 }
 0x7e4   : > { %p2051_p0 = pnand %p2050_p1, %p2886_p2  ;;  %p2056_p7 = por %p2055_p4, %p2054_p5 }
 0x7e6   : > { %p2052_p9 = pneg %p2051_p0 }
 0x7e8   : > { %p2057_p12 = pnand %p2056_p7, %p2052_p9 }
 0x7ea   : > { %2060 = shalt.err (!%p2057_p12)
}
 0x7eb   : > { %1585 = dma.vmem_to_hbm [thread:$0]  (%p2886_p2), %s1276_s6, 64, %s1278_s4, %s1261_s13  }
 0x7ec PF: > { %s2888_s19 = sld [smem:[#allocation37_spill]]  ;;  %p2891_p11 = scmp.ge.s32.totalorder %s2185_s26, 2 }
 0x7ed   : > { %s2889_s8 = sld [smem:[#allocation40_spill]] }
 0x7f2   : > { %s1289_s2 = sand.u32 1, %s2888_s19  }
 0x7f3   : > { %p2890_p6 = scmp.ne.s32.totalorder %s2889_s8, 0  ;;  %s1290_s28 = scalar_lea.sflag [#allocation12], %s1289_s2 }
 0x7f5   : > { %p1615_p10 = pnand %p2891_p11, %p2890_p6 }
 0x7f7   : > { %p1616_p8 = pneg %p1615_p10 }
 0x7f9   : > { %2136 = dma.done.wait (%p1616_p8), %s1290_s28, 64  }
 0x7fa   : > { %2138 = vsyncadd (%p1616_p8), %s1290_s28, 4294967232  ;;  %s69_s26 = sadd.s32 1, %s2185_s26   ;;  %s2892_s20 = sld [smem:[#allocation38_spill]] }
 0x7fb   : > { %p66_p13 = scmp.ge.s32.totalorder %s69_s26, 4   ;;  %s2893_s4 = sld [smem:[#allocation43_spill]] }
 0x7fc   : > { %s2894_s10 = sld [smem:[#allocation42_spill]]  ;;  %s2896_s2 = smov %s2145_s3 }
 0x7fd   : > { %s2895_s14 = sld [smem:[#allocation41_spill]]  ;;  %s2898_s21 = smov %s2157_s5 }
 0x7fe   : > { %s2899_s5 = smov %s2161_s22  ;;  %s2900_s22 = smov %s2538_s0 }
 0x7ff   : > { %s2901_s6 = smov %s2169_s23  ;;  %s2902_s23 = smov %s2173_s24 }
 0x800   : > { %s2897_s3 = smov %s2892_s20  ;;  %s2904_s25 = smov %s2181_s7 }
 0x801   :  { %68 = sbr.rel (!%p66_p13) target bundleno = 47 (0x2f), region = 176 }
 0x802   : > { %s2903_s24 = smov %s2894_s10 }
 0x803   : > { %s2905_s7 = smov %s2895_s14 }
 0x806   :  { %1296 = vsyncpa [#allocation11], 1 }
 0x807   :  { %1298 = vsyncpa [#allocation11 + $0x1], 1 }
 0x808   :  { %1299 = vsyncpa [#allocation15], 1 }
 0x809   :  { %1301 = vsyncpa [#allocation15 + $0x1], 1 }
 0x80a   :  { %1302 = vsyncpa [#allocation18], 1 }
 0x80b   :  { %1303 = vsyncpa [#allocation21], 1 }
 0x80c   :  { %1304 = vsyncpa [#allocation12], 1 }
 0x80d   :  { %1306 = vsyncpa [#allocation12 + $0x1], 1 }
 0x80e   :  { %1307 = vsyncpa [#allocation13], 1 }
 0x80f   :  { %1309 = vsyncpa [#allocation13 + $0x1], 1 }

</bundles_post_ra>
